<compile_context>
chip_gen: v5e
topology: v5e:2x2
jax: 0.10.0
libtpu: 0.0.40
codegen_flags: <defaults>
</compile_context>

<pallas_src>
import functools

import numpy as np
import jax
import jax.numpy as jnp
from jax.experimental import pallas as pl
from jax.experimental.pallas import tpu as pltpu


_LEAD = 8  # sublane-aligned row at which activations start in the staging buffer


def _round_up(x, m):
    return -(-x // m) * m


# ----------------------------------------------------------------------------
# Static planning (pure Python, trace time only)
# ----------------------------------------------------------------------------
def _pack_layout(dims):
    """Row offset of each layer's (k*cin, cout) block in the packed weight
    slab (8-row aligned), total rows, and the shared lane width."""
    offs, rows = [], 0
    for k, cin, _ in dims:
        offs.append(rows)
        rows += _round_up(k * cin, 8)
    cmax = max(c for _, _, c in dims)
    return offs, rows, cmax


def _layer_dims(chans, kernel):
    """(k, cin, cout) for the 8 conv layers, branch 1 then branch 2."""
    return [(int(kernel[b][i]), int(chans[i]), int(chans[i + 1]))
            for b in range(2) for i in range(4)]


def _make_plans(length, chans, kernel, stride):
    dims = _layer_dims(chans, kernel)
    offs, w_rows, cmax = _pack_layout(dims)
    pools = ((None, "max", None, "max"), (None, "avg", None, "avg"))
    plans, finals = [], []
    buf_rows, pool_rows = 0, 8
    for b in range(2):
        L = int(length)
        plan = []
        for i in range(4):
            k, s = int(kernel[b][i]), int(stride[i])
            assert k % 2 == 1, "padding=(k-1)//2 matches PyTorch only for odd k"
            pad = (k - 1) // 2
            assert pad <= _LEAD
            cin, cout = int(chans[i]), int(chans[i + 1])
            l_out = (L + 2 * pad - k) // s + 1
            idx = 4 * b + i
            pool = pools[b][i]
            plan.append(dict(k=k, s=s, pad=pad, cin=cin, cout=cout,
                             l_in=L, l_out=l_out,
                             w_off=offs[idx], bn_row=2 * idx, pool=pool))
            buf_rows = max(buf_rows, _LEAD + L + pad)
            if pool is not None:
                pool_rows = max(pool_rows, l_out)
            L = l_out // 2 if pool is not None else l_out
        plans.append(plan)
        finals.append(L)
    assert finals[0] == finals[1], "branch lengths must match for channel concat"
    meta = dict(w_rows=w_rows, cmax=cmax,
                cin_max=max(d[1] for d in dims),
                buf_rows=_round_up(buf_rows, 8),
                pool_rows=_round_up(pool_rows, 8),
                l_final=finals[0], c_half=int(chans[-1]))
    return plans, meta


# ----------------------------------------------------------------------------
# In-kernel building blocks
# ----------------------------------------------------------------------------
def _conv_relu_bn(act, buf_ref, w_ref, bn_ref, cfg):
    """Conv1d(zero pad, no bias) -> ReLU -> BN on a (B, l_in, cin) slab."""
    k, s, pad = cfg["k"], cfg["s"], cfg["pad"]
    cin, cout = cfg["cin"], cfg["cout"]
    l_in, l_out = cfg["l_in"], cfg["l_out"]
    off, bn_row = cfg["w_off"], cfg["bn_row"]
    bsz = act.shape[0]

    # Stage the activation; only the <= pad halo rows per side are zeroed
    # (rows outside [_LEAD - pad, _LEAD + l_in + pad) are never read).
    if pad:
        halo = jnp.zeros((bsz, pad, cin), jnp.float32)
        buf_ref[:, _LEAD - pad:_LEAD, :cin] = halo
        buf_ref[:, _LEAD + l_in:_LEAD + l_in + pad, :cin] = halo
    buf_ref[:, _LEAD:_LEAD + l_in, :cin] = act

    # im2col: k tap windows (conv stride applied in the read) lane-concatenated
    # into one (B*l_out, k*cin) slab -> a single MXU matmul per layer.
    base = _LEAD - pad
    taps = []
    for dk in range(k):
        if s == 1:
            taps.append(buf_ref[:, pl.ds(base + dk, l_out), :cin])
        else:
            taps.append(buf_ref[:, pl.ds(base + dk, l_out, stride=s), :cin])
    col = jnp.concatenate(taps, axis=-1).reshape(bsz * l_out, k * cin)

    w = w_ref[off:off + k * cin, :cout]                      # (k*cin, cout)
    acc = jnp.dot(col, w, preferred_element_type=jnp.float32)

    # ReLU, THEN inference-mode BatchNorm (do not fold BN into the weights).
    scale = bn_ref[bn_row:bn_row + 1, :cout]                 # (1, cout)
    shift = bn_ref[bn_row + 1:bn_row + 2, :cout]
    y = jnp.maximum(acc, 0.0) * scale + shift
    return y.reshape(bsz, l_out, cout)


def _pool2(y, pool_ref, op):
    """Window-2 stride-2 max/avg pool along rows via two stride-2 row reads."""
    bsz, l, c = y.shape
    l2 = l // 2                                              # floor, like PyTorch
    pool_ref[:, :l, :c] = y
    ev = pool_ref[:, pl.ds(0, l2, stride=2), :c]
    od = pool_ref[:, pl.ds(1, l2, stride=2), :c]
    return jnp.maximum(ev, od) if op == "max" else (ev + od) * 0.5


def _build_kernel(plans):
    def kernel(x_ref, w_ref, bn_ref, out_ref, buf_ref, pool_ref):
        def run_branch(plan):
            act = x_ref[...]                                  # (B, L, C0)
            for cfg in plan:
                act = _conv_relu_bn(act, buf_ref, w_ref, bn_ref, cfg)
                if cfg["pool"] is not None:
                    act = _pool2(act, pool_ref, cfg["pool"])
            return act

        x1 = run_branch(plans[0])                             # (B, lf, C)
        x2 = run_branch(plans[1])
        # One 2*C-lane-wide store; channel order matches torch.cat(dim=1).
        out_ref[...] = jnp.concatenate([x1, x2], axis=-1)
    return kernel


# ----------------------------------------------------------------------------
# Forward wrapper (single fused pallas_call)
# ----------------------------------------------------------------------------
def _pick_block_b(n):
    """Examples per grid step: large enough to feed the MXU, but keep >= 2
    grid steps when possible so v7x's two TensorCores both get work."""
    if n <= 1:
        return 1
    return max(1, min(8, n // 2))


def pac_forward(x_ncl, w_slab, bn_slab, *, channel, kernel, stride):
    """PAC forward. x_ncl: (N, img_channel, L) f32; (w_slab, bn_slab) from
    prepare_params(). Returns (N, 2*channel[-1], L_out) in NCL layout."""
    n, c0, length = x_ncl.shape
    chans = (int(c0),) + tuple(int(c) for c in channel)
    plans, meta = _make_plans(length, chans, kernel, stride)
    lf, c_half = meta["l_final"], meta["c_half"]
    assert w_slab.shape == (meta["w_rows"], meta["cmax"]), w_slab.shape
    assert bn_slab.shape == (2 * 8, meta["cmax"]), bn_slab.shape

    block_b = _pick_block_b(n)
    n_pad = _round_up(n, block_b)

    # NCL -> NLC so channels sit on TPU lanes inside the kernel (tiny host op;
    # kept host-side on purpose, see header).
    x_nlc = jnp.transpose(x_ncl, (0, 2, 1))
    if n_pad != n:
        x_nlc = jnp.pad(x_nlc, ((0, n_pad - n), (0, 0), (0, 0)))

    out_nlc = pl.pallas_call(
        _build_kernel(plans),
        out_shape=jax.ShapeDtypeStruct((n_pad, lf, 2 * c_half), jnp.float32),
        grid=(n_pad // block_b,),
        in_specs=[
            pl.BlockSpec((block_b, int(length), int(c0)), lambda g: (g, 0, 0)),
            pl.BlockSpec(w_slab.shape, lambda g: (0, 0)),
            pl.BlockSpec(bn_slab.shape, lambda g: (0, 0)),
        ],
        out_specs=pl.BlockSpec((block_b, lf, 2 * c_half), lambda g: (g, 0, 0)),
        scratch_shapes=[
            pltpu.VMEM((block_b, meta["buf_rows"], meta["cin_max"]), jnp.float32),
            pltpu.VMEM((block_b, meta["pool_rows"], meta["cmax"]), jnp.float32),
        ],
        compiler_params=pltpu.CompilerParams(
            dimension_semantics=("parallel",)),
    )(x_nlc, w_slab, bn_slab)

    # (N, L, [branch1 C | branch2 C]) -> NCL, matching torch.cat([x1,x2], 1).
    return jnp.transpose(out_nlc[:n], (0, 2, 1))


# ----------------------------------------------------------------------------
# Parameters (PyTorch-equivalent init) + one-time packing off the hot path
# ----------------------------------------------------------------------------
def init_params(key, channel, kernel, img_channel):
    """Conv1d weights ~ N(0, 0.05) (PAC.__init__ re-init); BN given small
    non-trivial running stats so the BN path is actually exercised."""
    chans = [img_channel] + list(channel)
    raw = []
    keys = jax.random.split(key, 5 * 8)
    ki = 0
    for b in range(2):
        for i in range(4):
            cin, cout, k = chans[i], chans[i + 1], kernel[b][i]
            w = 0.05 * jax.random.normal(keys[ki], (cout, cin, k), jnp.float32)
            gamma = 1.0 + 0.1 * jax.random.normal(keys[ki + 1], (cout,), jnp.float32)
            beta = 0.1 * jax.random.normal(keys[ki + 2], (cout,), jnp.float32)
            mean = 0.1 * jax.random.normal(keys[ki + 3], (cout,), jnp.float32)
            var = jax.random.uniform(keys[ki + 4], (cout,), jnp.float32, 0.5, 1.5)
            ki += 5
            raw.append(dict(w=w, gamma=gamma, beta=beta, mean=mean, var=var))
    return raw


def prepare_params(raw, eps=1e-5):
    """Pack all 8 layers into TWO arrays: a weight slab of per-layer
    (k*Cin, Cout) matmul blocks (8-row-aligned offsets, lane-padded once) and
    a (16, Cmax) BN scale/shift slab."""
    dims = [(int(p["w"].shape[2]), int(p["w"].shape[1]), int(p["w"].shape[0]))
            for p in raw]
    offs, rows, cmax = _pack_layout(dims)
    w_slab = np.zeros((rows, cmax), np.float32)
    bn_slab = np.zeros((2 * len(raw), cmax), np.float32)
    for i, p in enumerate(raw):
        k, cin, cout = dims[i]
        wf = np.transpose(np.asarray(p["w"], np.float32), (2, 1, 0)).reshape(k * cin, cout)
        w_slab[offs[i]:offs[i] + k * cin, :cout] = wf
        scale = np.asarray(p["gamma"], np.float32) / np.sqrt(
            np.asarray(p["var"], np.float32) + eps)
        shift = np.asarray(p["beta"], np.float32) - np.asarray(p["mean"], np.float32) * scale
        bn_slab[2 * i, :cout] = scale
        bn_slab[2 * i + 1, :cout] = shift
    return jnp.asarray(w_slab), jnp.asarray(bn_slab)


# ----------------------------------------------------------------------------
# Pure-JAX reference (correctness check only)
# ----------------------------------------------------------------------------
def pac_reference(x_ncl, raw, channel, kernel, stride, eps=1e-5):
    def conv_relu_bn(x, p, s):
        w = p["w"]
        pad = (w.shape[2] - 1) // 2
        y = jax.lax.conv_general_dilated(
            x, w, (s,), [(pad, pad)], dimension_numbers=("NCH", "OIH", "NCH"))
        y = jnp.maximum(y, 0.0)
        scale = p["gamma"] / jnp.sqrt(p["var"] + eps)
        shift = p["beta"] - p["mean"] * scale
        return y * scale[None, :, None] + shift[None, :, None]

    def pool(x, op):
        n, c, l = x.shape
        lh = l // 2
        xr = x[:, :, :2 * lh].reshape(n, c, lh, 2)
        return jnp.max(xr, axis=-1) if op == "max" else jnp.mean(xr, axis=-1)

    def branch(params4, op):
        h = conv_relu_bn(x_ncl, params4[0], stride[0])
        h = conv_relu_bn(h, params4[1], stride[1])
        h = pool(h, op)
        h = conv_relu_bn(h, params4[2], stride[2])
        h = conv_relu_bn(h, params4[3], stride[3])
        return pool(h, op)

    x1 = branch(raw[:4], "max")
    x2 = branch(raw[4:], "avg")
    return jnp.concatenate([x1, x2], axis=1)


# ----------------------------------------------------------------------------
if __name__ == "__main__":
    channel = (8, 8, 16, 16)
    kernel = ((3, 5, 3, 3), (5, 3, 3, 3))   # kernel[0] -> branch 1, kernel[1] -> branch 2
    stride = (1, 2, 1, 1)
    img_channel = 12                        # module default
    batch, length = 2, 32

    key = jax.random.PRNGKey(0)
    kx, kp = jax.random.split(key)
    x = jax.random.normal(kx, (batch, img_channel, length), dtype=jnp.float32)
    raw = init_params(kp, channel, kernel, img_channel)
    w_slab, bn_slab = prepare_params(raw)

    fwd = jax.jit(functools.partial(pac_forward, channel=channel, kernel=kernel,
                                    stride=stride))
    out = jax.block_until_ready(fwd(x, w_slab, bn_slab))
    ref = jax.block_until_ready(pac_reference(x, raw, channel, kernel, stride))

    assert out.shape == ref.shape, (out.shape, ref.shape)
    assert out.shape[1] == 2 * channel[-1]           # feature_dim = channel[3]*2
    max_err = float(jnp.max(jnp.abs(out - ref)))
    assert jnp.allclose(out, ref, atol=1e-3, rtol=1e-3), max_err
    print("KERNEL_OK")
</pallas_src>

<mosaic_0001>
module attributes {stable_mosaic.version = 11 : i64} {
  func.func @kernel(%arg0: i32, %arg1: memref<1x32x12xf32, #tpu.memory_space<vmem>>, %arg2: memref<312x16xf32, #tpu.memory_space<vmem>>, %arg3: memref<16x16xf32, #tpu.memory_space<vmem>>, %arg4: memref<1x4x32xf32, #tpu.memory_space<vmem>>, %arg5: memref<1x48x16xf32, #tpu.memory_space<vmem>>, %arg6: memref<1x16x16xf32, #tpu.memory_space<vmem>>) attributes {dimension_semantics = [#tpu.dimension_semantics<parallel>], iteration_bounds = array<i64: 2>, scalar_prefetch = 0 : i64, scratch_operands = 2 : i64, tpu.core_type = #tpu.core_type<tc>, window_params = [{transform_indices = @transform_0, window_bounds = array<i64: 1, 32, 12>}, {pipeline_mode = #tpu.pipeline_mode<synchronous>, transform_indices = @transform_1, window_bounds = array<i64: 312, 16>}, {pipeline_mode = #tpu.pipeline_mode<synchronous>, transform_indices = @transform_2, window_bounds = array<i64: 16, 16>}, {transform_indices = @transform_3, window_bounds = array<i64: 1, 4, 32>}]} {
    %c0 = arith.constant 0 : index
    %c0_0 = arith.constant 0 : index
    %c0_1 = arith.constant 0 : index
    %0 = vector.load %arg1[%c0, %c0_0, %c0_1] : memref<1x32x12xf32, #tpu.memory_space<vmem>>, vector<1x32x12xf32>
    %cst = arith.constant 0.000000e+00 : f32
    %1 = vector.broadcast %cst : f32 to vector<1x1x12xf32>
    %c0_2 = arith.constant 0 : index
    %c7 = arith.constant 7 : index
    %c0_3 = arith.constant 0 : index
    %2 = vector.load %arg5[%c0_2, %c7, %c0_3] : memref<1x48x16xf32, #tpu.memory_space<vmem>>, vector<1x1x12xf32>
    tpu.vector_store %arg5[%c0_2, %c7, %c0_3], %1 {strides = array<i32>} : memref<1x48x16xf32, #tpu.memory_space<vmem>>, vector<1x1x12xf32>,
    %c0_4 = arith.constant 0 : index
    %c40 = arith.constant 40 : index
    %c0_5 = arith.constant 0 : index
    %3 = vector.load %arg5[%c0_4, %c40, %c0_5] : memref<1x48x16xf32, #tpu.memory_space<vmem>>, vector<1x1x12xf32>
    tpu.vector_store %arg5[%c0_4, %c40, %c0_5], %1 {strides = array<i32>} : memref<1x48x16xf32, #tpu.memory_space<vmem>>, vector<1x1x12xf32>,
    %c0_6 = arith.constant 0 : index
    %c8 = arith.constant 8 : index
    %c0_7 = arith.constant 0 : index
    %4 = vector.load %arg5[%c0_6, %c8, %c0_7] : memref<1x48x16xf32, #tpu.memory_space<vmem>>, vector<1x32x12xf32>
    tpu.vector_store %arg5[%c0_6, %c8, %c0_7], %0 {strides = array<i32>} : memref<1x48x16xf32, #tpu.memory_space<vmem>>, vector<1x32x12xf32>,
    %c0_8 = arith.constant 0 : index
    %c7_9 = arith.constant 7 : index
    %c0_10 = arith.constant 0 : index
    %5 = vector.load %arg5[%c0_8, %c7_9, %c0_10] : memref<1x48x16xf32, #tpu.memory_space<vmem>>, vector<1x32x12xf32>
    %c0_11 = arith.constant 0 : index
    %c8_12 = arith.constant 8 : index
    %c0_13 = arith.constant 0 : index
    %6 = vector.load %arg5[%c0_11, %c8_12, %c0_13] : memref<1x48x16xf32, #tpu.memory_space<vmem>>, vector<1x32x12xf32>
    %c0_14 = arith.constant 0 : index
    %c9 = arith.constant 9 : index
    %c0_15 = arith.constant 0 : index
    %7 = vector.load %arg5[%c0_14, %c9, %c0_15] : memref<1x48x16xf32, #tpu.memory_space<vmem>>, vector<1x32x12xf32>
    %8 = tpu.concatenate %5, %6, %7 in 2 : vector<1x32x12xf32>, vector<1x32x12xf32>, vector<1x32x12xf32> -> vector<1x32x36xf32>
    %9 = vector.shape_cast %8 : vector<1x32x36xf32> to vector<32x36xf32>
    %c0_16 = arith.constant 0 : index
    %c0_17 = arith.constant 0 : index
    %10 = vector.load %arg2[%c0_16, %c0_17] : memref<312x16xf32, #tpu.memory_space<vmem>>, vector<36x8xf32>
    %cst_18 = arith.constant dense<0.000000e+00> : vector<32x8xf32>
    %11 = tpu.matmul %9, %10, %cst_18 {dimension_numbers = #tpu.dot_dimension_numbers<[1], [0], [0], [1], [0, 0, 1, 1], [], []>} : vector<32x36xf32>, vector<36x8xf32>, vector<32x8xf32> -> vector<32x8xf32>
    %c0_19 = arith.constant 0 : index
    %c0_20 = arith.constant 0 : index
    %12 = vector.load %arg3[%c0_19, %c0_20] : memref<16x16xf32, #tpu.memory_space<vmem>>, vector<1x8xf32>
    %c1 = arith.constant 1 : index
    %c0_21 = arith.constant 0 : index
    %13 = vector.load %arg3[%c1, %c0_21] : memref<16x16xf32, #tpu.memory_space<vmem>>, vector<1x8xf32>
    %cst_22 = arith.constant 0.000000e+00 : f32
    %14 = vector.broadcast %cst_22 : f32 to vector<32x8xf32>
    %15 = arith.maximumf %11, %14 : vector<32x8xf32>
    %16 = vector.broadcast %12 : vector<1x8xf32> to vector<32x8xf32>
    %17 = arith.mulf %15, %16 : vector<32x8xf32>
    %18 = vector.broadcast %13 : vector<1x8xf32> to vector<32x8xf32>
    %19 = arith.addf %17, %18 : vector<32x8xf32>
    %20 = vector.shape_cast %19 : vector<32x8xf32> to vector<1x32x8xf32>
    %cst_23 = arith.constant 0.000000e+00 : f32
    %21 = vector.broadcast %cst_23 : f32 to vector<1x2x8xf32>
    %c0_24 = arith.constant 0 : index
    %c6 = arith.constant 6 : index
    %c0_25 = arith.constant 0 : index
    %22 = vector.load %arg5[%c0_24, %c6, %c0_25] : memref<1x48x16xf32, #tpu.memory_space<vmem>>, vector<1x2x8xf32>
    tpu.vector_store %arg5[%c0_24, %c6, %c0_25], %21 {strides = array<i32>} : memref<1x48x16xf32, #tpu.memory_space<vmem>>, vector<1x2x8xf32>,
    %c0_26 = arith.constant 0 : index
    %c40_27 = arith.constant 40 : index
    %c0_28 = arith.constant 0 : index
    %23 = vector.load %arg5[%c0_26, %c40_27, %c0_28] : memref<1x48x16xf32, #tpu.memory_space<vmem>>, vector<1x2x8xf32>
    tpu.vector_store %arg5[%c0_26, %c40_27, %c0_28], %21 {strides = array<i32>} : memref<1x48x16xf32, #tpu.memory_space<vmem>>, vector<1x2x8xf32>,
    %c0_29 = arith.constant 0 : index
    %c8_30 = arith.constant 8 : index
    %c0_31 = arith.constant 0 : index
    %24 = vector.load %arg5[%c0_29, %c8_30, %c0_31] : memref<1x48x16xf32, #tpu.memory_space<vmem>>, vector<1x32x8xf32>
    tpu.vector_store %arg5[%c0_29, %c8_30, %c0_31], %20 {strides = array<i32>} : memref<1x48x16xf32, #tpu.memory_space<vmem>>, vector<1x32x8xf32>,
    %c0_32 = arith.constant 0 : index
    %c6_33 = arith.constant 6 : index
    %c0_34 = arith.constant 0 : index
    %25 = tpu.strided_load %arg5[%c0_32, %c6_33, %c0_34] {strides = array<i32: 1, 2, 1>} : memref<1x48x16xf32, #tpu.memory_space<vmem>>, vector<1x16x8xf32>
    %c0_35 = arith.constant 0 : index
    %c7_36 = arith.constant 7 : index
    %c0_37 = arith.constant 0 : index
    %26 = tpu.strided_load %arg5[%c0_35, %c7_36, %c0_37] {strides = array<i32: 1, 2, 1>} : memref<1x48x16xf32, #tpu.memory_space<vmem>>, vector<1x16x8xf32>
    %c0_38 = arith.constant 0 : index
    %c8_39 = arith.constant 8 : index
    %c0_40 = arith.constant 0 : index
    %27 = tpu.strided_load %arg5[%c0_38, %c8_39, %c0_40] {strides = array<i32: 1, 2, 1>} : memref<1x48x16xf32, #tpu.memory_space<vmem>>, vector<1x16x8xf32>
    %c0_41 = arith.constant 0 : index
    %c9_42 = arith.constant 9 : index
    %c0_43 = arith.constant 0 : index
    %28 = tpu.strided_load %arg5[%c0_41, %c9_42, %c0_43] {strides = array<i32: 1, 2, 1>} : memref<1x48x16xf32, #tpu.memory_space<vmem>>, vector<1x16x8xf32>
    %c0_44 = arith.constant 0 : index
    %c10 = arith.constant 10 : index
    %c0_45 = arith.constant 0 : index
    %29 = tpu.strided_load %arg5[%c0_44, %c10, %c0_45] {strides = array<i32: 1, 2, 1>} : memref<1x48x16xf32, #tpu.memory_space<vmem>>, vector<1x16x8xf32>
    %30 = tpu.concatenate %25, %26, %27, %28, %29 in 2 : vector<1x16x8xf32>, vector<1x16x8xf32>, vector<1x16x8xf32>, vector<1x16x8xf32>, vector<1x16x8xf32> -> vector<1x16x40xf32>
    %31 = vector.shape_cast %30 : vector<1x16x40xf32> to vector<16x40xf32>
    %c40_46 = arith.constant 40 : index
    %c0_47 = arith.constant 0 : index
    %32 = vector.load %arg2[%c40_46, %c0_47] : memref<312x16xf32, #tpu.memory_space<vmem>>, vector<40x8xf32>
    %cst_48 = arith.constant dense<0.000000e+00> : vector<16x8xf32>
    %33 = tpu.matmul %31, %32, %cst_48 {dimension_numbers = #tpu.dot_dimension_numbers<[1], [0], [0], [1], [0, 0, 1, 1], [], []>} : vector<16x40xf32>, vector<40x8xf32>, vector<16x8xf32> -> vector<16x8xf32>
    %c2 = arith.constant 2 : index
    %c0_49 = arith.constant 0 : index
    %34 = vector.load %arg3[%c2, %c0_49] : memref<16x16xf32, #tpu.memory_space<vmem>>, vector<1x8xf32>
    %c3 = arith.constant 3 : index
    %c0_50 = arith.constant 0 : index
    %35 = vector.load %arg3[%c3, %c0_50] : memref<16x16xf32, #tpu.memory_space<vmem>>, vector<1x8xf32>
    %cst_51 = arith.constant 0.000000e+00 : f32
    %36 = vector.broadcast %cst_51 : f32 to vector<16x8xf32>
    %37 = arith.maximumf %33, %36 : vector<16x8xf32>
    %38 = vector.broadcast %34 : vector<1x8xf32> to vector<16x8xf32>
    %39 = arith.mulf %37, %38 : vector<16x8xf32>
    %40 = vector.broadcast %35 : vector<1x8xf32> to vector<16x8xf32>
    %41 = arith.addf %39, %40 : vector<16x8xf32>
    %42 = vector.shape_cast %41 : vector<16x8xf32> to vector<1x16x8xf32>
    %c0_52 = arith.constant 0 : index
    %c0_53 = arith.constant 0 : index
    %c0_54 = arith.constant 0 : index
    %43 = vector.load %arg6[%c0_52, %c0_53, %c0_54] : memref<1x16x16xf32, #tpu.memory_space<vmem>>, vector<1x16x8xf32>
    tpu.vector_store %arg6[%c0_52, %c0_53, %c0_54], %42 {strides = array<i32>} : memref<1x16x16xf32, #tpu.memory_space<vmem>>, vector<1x16x8xf32>,
    %c0_55 = arith.constant 0 : index
    %c0_56 = arith.constant 0 : index
    %c0_57 = arith.constant 0 : index
    %44 = tpu.strided_load %arg6[%c0_55, %c0_56, %c0_57] {strides = array<i32: 1, 2, 1>} : memref<1x16x16xf32, #tpu.memory_space<vmem>>, vector<1x8x8xf32>
    %c0_58 = arith.constant 0 : index
    %c1_59 = arith.constant 1 : index
    %c0_60 = arith.constant 0 : index
    %45 = tpu.strided_load %arg6[%c0_58, %c1_59, %c0_60] {strides = array<i32: 1, 2, 1>} : memref<1x16x16xf32, #tpu.memory_space<vmem>>, vector<1x8x8xf32>
    %46 = arith.maximumf %44, %45 : vector<1x8x8xf32>
    %cst_61 = arith.constant 0.000000e+00 : f32
    %47 = vector.broadcast %cst_61 : f32 to vector<1x1x8xf32>
    %c0_62 = arith.constant 0 : index
    %c7_63 = arith.constant 7 : index
    %c0_64 = arith.constant 0 : index
    %48 = vector.load %arg5[%c0_62, %c7_63, %c0_64] : memref<1x48x16xf32, #tpu.memory_space<vmem>>, vector<1x1x8xf32>
    tpu.vector_store %arg5[%c0_62, %c7_63, %c0_64], %47 {strides = array<i32>} : memref<1x48x16xf32, #tpu.memory_space<vmem>>, vector<1x1x8xf32>,
    %c0_65 = arith.constant 0 : index
    %c16 = arith.constant 16 : index
    %c0_66 = arith.constant 0 : index
    %49 = vector.load %arg5[%c0_65, %c16, %c0_66] : memref<1x48x16xf32, #tpu.memory_space<vmem>>, vector<1x1x8xf32>
    tpu.vector_store %arg5[%c0_65, %c16, %c0_66], %47 {strides = array<i32>} : memref<1x48x16xf32, #tpu.memory_space<vmem>>, vector<1x1x8xf32>,
    %c0_67 = arith.constant 0 : index
    %c8_68 = arith.constant 8 : index
    %c0_69 = arith.constant 0 : index
    %50 = vector.load %arg5[%c0_67, %c8_68, %c0_69] : memref<1x48x16xf32, #tpu.memory_space<vmem>>, vector<1x8x8xf32>
    tpu.vector_store %arg5[%c0_67, %c8_68, %c0_69], %46 {strides = array<i32>} : memref<1x48x16xf32, #tpu.memory_space<vmem>>, vector<1x8x8xf32>,
    %c0_70 = arith.constant 0 : index
    %c7_71 = arith.constant 7 : index
    %c0_72 = arith.constant 0 : index
    %51 = vector.load %arg5[%c0_70, %c7_71, %c0_72] : memref<1x48x16xf32, #tpu.memory_space<vmem>>, vector<1x8x8xf32>
    %c0_73 = arith.constant 0 : index
    %c8_74 = arith.constant 8 : index
    %c0_75 = arith.constant 0 : index
    %52 = vector.load %arg5[%c0_73, %c8_74, %c0_75] : memref<1x48x16xf32, #tpu.memory_space<vmem>>, vector<1x8x8xf32>
    %c0_76 = arith.constant 0 : index
    %c9_77 = arith.constant 9 : index
    %c0_78 = arith.constant 0 : index
    %53 = vector.load %arg5[%c0_76, %c9_77, %c0_78] : memref<1x48x16xf32, #tpu.memory_space<vmem>>, vector<1x8x8xf32>
    %54 = tpu.concatenate %51, %52, %53 in 2 : vector<1x8x8xf32>, vector<1x8x8xf32>, vector<1x8x8xf32> -> vector<1x8x24xf32>
    %55 = vector.shape_cast %54 : vector<1x8x24xf32> to vector<8x24xf32>
    %c80 = arith.constant 80 : index
    %c0_79 = arith.constant 0 : index
    %56 = vector.load %arg2[%c80, %c0_79] : memref<312x16xf32, #tpu.memory_space<vmem>>, vector<24x16xf32>
    %cst_80 = arith.constant dense<0.000000e+00> : vector<8x16xf32>
    %57 = tpu.matmul %55, %56, %cst_80 {dimension_numbers = #tpu.dot_dimension_numbers<[1], [0], [0], [1], [0, 0, 1, 1], [], []>} : vector<8x24xf32>, vector<24x16xf32>, vector<8x16xf32> -> vector<8x16xf32>
    %c4 = arith.constant 4 : index
    %c0_81 = arith.constant 0 : index
    %58 = vector.load %arg3[%c4, %c0_81] : memref<16x16xf32, #tpu.memory_space<vmem>>, vector<1x16xf32>
    %c5 = arith.constant 5 : index
    %c0_82 = arith.constant 0 : index
    %59 = vector.load %arg3[%c5, %c0_82] : memref<16x16xf32, #tpu.memory_space<vmem>>, vector<1x16xf32>
    %cst_83 = arith.constant 0.000000e+00 : f32
    %60 = vector.broadcast %cst_83 : f32 to vector<8x16xf32>
    %61 = arith.maximumf %57, %60 : vector<8x16xf32>
    %62 = vector.broadcast %58 : vector<1x16xf32> to vector<8x16xf32>
    %63 = arith.mulf %61, %62 : vector<8x16xf32>
    %64 = vector.broadcast %59 : vector<1x16xf32> to vector<8x16xf32>
    %65 = arith.addf %63, %64 : vector<8x16xf32>
    %66 = vector.shape_cast %65 : vector<8x16xf32> to vector<1x8x16xf32>
    %cst_84 = arith.constant 0.000000e+00 : f32
    %67 = vector.broadcast %cst_84 : f32 to vector<1x1x16xf32>
    %c0_85 = arith.constant 0 : index
    %c7_86 = arith.constant 7 : index
    %c0_87 = arith.constant 0 : index
    %68 = vector.load %arg5[%c0_85, %c7_86, %c0_87] : memref<1x48x16xf32, #tpu.memory_space<vmem>>, vector<1x1x16xf32>
    tpu.vector_store %arg5[%c0_85, %c7_86, %c0_87], %67 {strides = array<i32>} : memref<1x48x16xf32, #tpu.memory_space<vmem>>, vector<1x1x16xf32>,
    %c0_88 = arith.constant 0 : index
    %c16_89 = arith.constant 16 : index
    %c0_90 = arith.constant 0 : index
    %69 = vector.load %arg5[%c0_88, %c16_89, %c0_90] : memref<1x48x16xf32, #tpu.memory_space<vmem>>, vector<1x1x16xf32>
    tpu.vector_store %arg5[%c0_88, %c16_89, %c0_90], %67 {strides = array<i32>} : memref<1x48x16xf32, #tpu.memory_space<vmem>>, vector<1x1x16xf32>,
    %c0_91 = arith.constant 0 : index
    %c8_92 = arith.constant 8 : index
    %c0_93 = arith.constant 0 : index
    %70 = vector.load %arg5[%c0_91, %c8_92, %c0_93] : memref<1x48x16xf32, #tpu.memory_space<vmem>>, vector<1x8x16xf32>
    tpu.vector_store %arg5[%c0_91, %c8_92, %c0_93], %66 {strides = array<i32>} : memref<1x48x16xf32, #tpu.memory_space<vmem>>, vector<1x8x16xf32>,
    %c0_94 = arith.constant 0 : index
    %c7_95 = arith.constant 7 : index
    %c0_96 = arith.constant 0 : index
    %71 = vector.load %arg5[%c0_94, %c7_95, %c0_96] : memref<1x48x16xf32, #tpu.memory_space<vmem>>, vector<1x8x16xf32>
    %c0_97 = arith.constant 0 : index
    %c8_98 = arith.constant 8 : index
    %c0_99 = arith.constant 0 : index
    %72 = vector.load %arg5[%c0_97, %c8_98, %c0_99] : memref<1x48x16xf32, #tpu.memory_space<vmem>>, vector<1x8x16xf32>
    %c0_100 = arith.constant 0 : index
    %c9_101 = arith.constant 9 : index
    %c0_102 = arith.constant 0 : index
    %73 = vector.load %arg5[%c0_100, %c9_101, %c0_102] : memref<1x48x16xf32, #tpu.memory_space<vmem>>, vector<1x8x16xf32>
    %74 = tpu.concatenate %71, %72, %73 in 2 : vector<1x8x16xf32>, vector<1x8x16xf32>, vector<1x8x16xf32> -> vector<1x8x48xf32>
    %75 = vector.shape_cast %74 : vector<1x8x48xf32> to vector<8x48xf32>
    %c104 = arith.constant 104 : index
    %c0_103 = arith.constant 0 : index
    %76 = vector.load %arg2[%c104, %c0_103] : memref<312x16xf32, #tpu.memory_space<vmem>>, vector<48x16xf32>
    %cst_104 = arith.constant dense<0.000000e+00> : vector<8x16xf32>
    %77 = tpu.matmul %75, %76, %cst_104 {dimension_numbers = #tpu.dot_dimension_numbers<[1], [0], [0], [1], [0, 0, 1, 1], [], []>} : vector<8x48xf32>, vector<48x16xf32>, vector<8x16xf32> -> vector<8x16xf32>
    %c6_105 = arith.constant 6 : index
    %c0_106 = arith.constant 0 : index
    %78 = vector.load %arg3[%c6_105, %c0_106] : memref<16x16xf32, #tpu.memory_space<vmem>>, vector<1x16xf32>
    %c7_107 = arith.constant 7 : index
    %c0_108 = arith.constant 0 : index
    %79 = vector.load %arg3[%c7_107, %c0_108] : memref<16x16xf32, #tpu.memory_space<vmem>>, vector<1x16xf32>
    %cst_109 = arith.constant 0.000000e+00 : f32
    %80 = vector.broadcast %cst_109 : f32 to vector<8x16xf32>
    %81 = arith.maximumf %77, %80 : vector<8x16xf32>
    %82 = vector.broadcast %78 : vector<1x16xf32> to vector<8x16xf32>
    %83 = arith.mulf %81, %82 : vector<8x16xf32>
    %84 = vector.broadcast %79 : vector<1x16xf32> to vector<8x16xf32>
    %85 = arith.addf %83, %84 : vector<8x16xf32>
    %86 = vector.shape_cast %85 : vector<8x16xf32> to vector<1x8x16xf32>
    %c0_110 = arith.constant 0 : index
    %c0_111 = arith.constant 0 : index
    %c0_112 = arith.constant 0 : index
    %87 = vector.load %arg6[%c0_110, %c0_111, %c0_112] : memref<1x16x16xf32, #tpu.memory_space<vmem>>, vector<1x8x16xf32>
    tpu.vector_store %arg6[%c0_110, %c0_111, %c0_112], %86 {strides = array<i32>} : memref<1x16x16xf32, #tpu.memory_space<vmem>>, vector<1x8x16xf32>,
    %c0_113 = arith.constant 0 : index
    %c0_114 = arith.constant 0 : index
    %c0_115 = arith.constant 0 : index
    %88 = tpu.strided_load %arg6[%c0_113, %c0_114, %c0_115] {strides = array<i32: 1, 2, 1>} : memref<1x16x16xf32, #tpu.memory_space<vmem>>, vector<1x4x16xf32>
    %c0_116 = arith.constant 0 : index
    %c1_117 = arith.constant 1 : index
    %c0_118 = arith.constant 0 : index
    %89 = tpu.strided_load %arg6[%c0_116, %c1_117, %c0_118] {strides = array<i32: 1, 2, 1>} : memref<1x16x16xf32, #tpu.memory_space<vmem>>, vector<1x4x16xf32>
    %90 = arith.maximumf %88, %89 : vector<1x4x16xf32>
    %c0_119 = arith.constant 0 : index
    %c0_120 = arith.constant 0 : index
    %c0_121 = arith.constant 0 : index
    %91 = vector.load %arg1[%c0_119, %c0_120, %c0_121] : memref<1x32x12xf32, #tpu.memory_space<vmem>>, vector<1x32x12xf32>
    %cst_122 = arith.constant 0.000000e+00 : f32
    %92 = vector.broadcast %cst_122 : f32 to vector<1x2x12xf32>
    %c0_123 = arith.constant 0 : index
    %c6_124 = arith.constant 6 : index
    %c0_125 = arith.constant 0 : index
    %93 = vector.load %arg5[%c0_123, %c6_124, %c0_125] : memref<1x48x16xf32, #tpu.memory_space<vmem>>, vector<1x2x12xf32>
    tpu.vector_store %arg5[%c0_123, %c6_124, %c0_125], %92 {strides = array<i32>} : memref<1x48x16xf32, #tpu.memory_space<vmem>>, vector<1x2x12xf32>,
    %c0_126 = arith.constant 0 : index
    %c40_127 = arith.constant 40 : index
    %c0_128 = arith.constant 0 : index
    %94 = vector.load %arg5[%c0_126, %c40_127, %c0_128] : memref<1x48x16xf32, #tpu.memory_space<vmem>>, vector<1x2x12xf32>
    tpu.vector_store %arg5[%c0_126, %c40_127, %c0_128], %92 {strides = array<i32>} : memref<1x48x16xf32, #tpu.memory_space<vmem>>, vector<1x2x12xf32>,
    %c0_129 = arith.constant 0 : index
    %c8_130 = arith.constant 8 : index
    %c0_131 = arith.constant 0 : index
    %95 = vector.load %arg5[%c0_129, %c8_130, %c0_131] : memref<1x48x16xf32, #tpu.memory_space<vmem>>, vector<1x32x12xf32>
    tpu.vector_store %arg5[%c0_129, %c8_130, %c0_131], %91 {strides = array<i32>} : memref<1x48x16xf32, #tpu.memory_space<vmem>>, vector<1x32x12xf32>,
    %c0_132 = arith.constant 0 : index
    %c6_133 = arith.constant 6 : index
    %c0_134 = arith.constant 0 : index
    %96 = vector.load %arg5[%c0_132, %c6_133, %c0_134] : memref<1x48x16xf32, #tpu.memory_space<vmem>>, vector<1x32x12xf32>
    %c0_135 = arith.constant 0 : index
    %c7_136 = arith.constant 7 : index
    %c0_137 = arith.constant 0 : index
    %97 = vector.load %arg5[%c0_135, %c7_136, %c0_137] : memref<1x48x16xf32, #tpu.memory_space<vmem>>, vector<1x32x12xf32>
    %c0_138 = arith.constant 0 : index
    %c8_139 = arith.constant 8 : index
    %c0_140 = arith.constant 0 : index
    %98 = vector.load %arg5[%c0_138, %c8_139, %c0_140] : memref<1x48x16xf32, #tpu.memory_space<vmem>>, vector<1x32x12xf32>
    %c0_141 = arith.constant 0 : index
    %c9_142 = arith.constant 9 : index
    %c0_143 = arith.constant 0 : index
    %99 = vector.load %arg5[%c0_141, %c9_142, %c0_143] : memref<1x48x16xf32, #tpu.memory_space<vmem>>, vector<1x32x12xf32>
    %c0_144 = arith.constant 0 : index
    %c10_145 = arith.constant 10 : index
    %c0_146 = arith.constant 0 : index
    %100 = vector.load %arg5[%c0_144, %c10_145, %c0_146] : memref<1x48x16xf32, #tpu.memory_space<vmem>>, vector<1x32x12xf32>
    %101 = tpu.concatenate %96, %97, %98, %99, %100 in 2 : vector<1x32x12xf32>, vector<1x32x12xf32>, vector<1x32x12xf32>, vector<1x32x12xf32>, vector<1x32x12xf32> -> vector<1x32x60xf32>
    %102 = vector.shape_cast %101 : vector<1x32x60xf32> to vector<32x60xf32>
    %c152 = arith.constant 152 : index
    %c0_147 = arith.constant 0 : index
    %103 = vector.load %arg2[%c152, %c0_147] : memref<312x16xf32, #tpu.memory_space<vmem>>, vector<60x8xf32>
    %cst_148 = arith.constant dense<0.000000e+00> : vector<32x8xf32>
    %104 = tpu.matmul %102, %103, %cst_148 {dimension_numbers = #tpu.dot_dimension_numbers<[1], [0], [0], [1], [0, 0, 1, 1], [], []>} : vector<32x60xf32>, vector<60x8xf32>, vector<32x8xf32> -> vector<32x8xf32>
    %c8_149 = arith.constant 8 : index
    %c0_150 = arith.constant 0 : index
    %105 = vector.load %arg3[%c8_149, %c0_150] : memref<16x16xf32, #tpu.memory_space<vmem>>, vector<1x8xf32>
    %c9_151 = arith.constant 9 : index
    %c0_152 = arith.constant 0 : index
    %106 = vector.load %arg3[%c9_151, %c0_152] : memref<16x16xf32, #tpu.memory_space<vmem>>, vector<1x8xf32>
    %cst_153 = arith.constant 0.000000e+00 : f32
    %107 = vector.broadcast %cst_153 : f32 to vector<32x8xf32>
    %108 = arith.maximumf %104, %107 : vector<32x8xf32>
    %109 = vector.broadcast %105 : vector<1x8xf32> to vector<32x8xf32>
    %110 = arith.mulf %108, %109 : vector<32x8xf32>
    %111 = vector.broadcast %106 : vector<1x8xf32> to vector<32x8xf32>
    %112 = arith.addf %110, %111 : vector<32x8xf32>
    %113 = vector.shape_cast %112 : vector<32x8xf32> to vector<1x32x8xf32>
    %cst_154 = arith.constant 0.000000e+00 : f32
    %114 = vector.broadcast %cst_154 : f32 to vector<1x1x8xf32>
    %c0_155 = arith.constant 0 : index
    %c7_156 = arith.constant 7 : index
    %c0_157 = arith.constant 0 : index
    %115 = vector.load %arg5[%c0_155, %c7_156, %c0_157] : memref<1x48x16xf32, #tpu.memory_space<vmem>>, vector<1x1x8xf32>
    tpu.vector_store %arg5[%c0_155, %c7_156, %c0_157], %114 {strides = array<i32>} : memref<1x48x16xf32, #tpu.memory_space<vmem>>, vector<1x1x8xf32>,
    %c0_158 = arith.constant 0 : index
    %c40_159 = arith.constant 40 : index
    %c0_160 = arith.constant 0 : index
    %116 = vector.load %arg5[%c0_158, %c40_159, %c0_160] : memref<1x48x16xf32, #tpu.memory_space<vmem>>, vector<1x1x8xf32>
    tpu.vector_store %arg5[%c0_158, %c40_159, %c0_160], %114 {strides = array<i32>} : memref<1x48x16xf32, #tpu.memory_space<vmem>>, vector<1x1x8xf32>,
    %c0_161 = arith.constant 0 : index
    %c8_162 = arith.constant 8 : index
    %c0_163 = arith.constant 0 : index
    %117 = vector.load %arg5[%c0_161, %c8_162, %c0_163] : memref<1x48x16xf32, #tpu.memory_space<vmem>>, vector<1x32x8xf32>
    tpu.vector_store %arg5[%c0_161, %c8_162, %c0_163], %113 {strides = array<i32>} : memref<1x48x16xf32, #tpu.memory_space<vmem>>, vector<1x32x8xf32>,
    %c0_164 = arith.constant 0 : index
    %c7_165 = arith.constant 7 : index
    %c0_166 = arith.constant 0 : index
    %118 = tpu.strided_load %arg5[%c0_164, %c7_165, %c0_166] {strides = array<i32: 1, 2, 1>} : memref<1x48x16xf32, #tpu.memory_space<vmem>>, vector<1x16x8xf32>
    %c0_167 = arith.constant 0 : index
    %c8_168 = arith.constant 8 : index
    %c0_169 = arith.constant 0 : index
    %119 = tpu.strided_load %arg5[%c0_167, %c8_168, %c0_169] {strides = array<i32: 1, 2, 1>} : memref<1x48x16xf32, #tpu.memory_space<vmem>>, vector<1x16x8xf32>
    %c0_170 = arith.constant 0 : index
    %c9_171 = arith.constant 9 : index
    %c0_172 = arith.constant 0 : index
    %120 = tpu.strided_load %arg5[%c0_170, %c9_171, %c0_172] {strides = array<i32: 1, 2, 1>} : memref<1x48x16xf32, #tpu.memory_space<vmem>>, vector<1x16x8xf32>
    %121 = tpu.concatenate %118, %119, %120 in 2 : vector<1x16x8xf32>, vector<1x16x8xf32>, vector<1x16x8xf32> -> vector<1x16x24xf32>
    %122 = vector.shape_cast %121 : vector<1x16x24xf32> to vector<16x24xf32>
    %c216 = arith.constant 216 : index
    %c0_173 = arith.constant 0 : index
    %123 = vector.load %arg2[%c216, %c0_173] : memref<312x16xf32, #tpu.memory_space<vmem>>, vector<24x8xf32>
    %cst_174 = arith.constant dense<0.000000e+00> : vector<16x8xf32>
    %124 = tpu.matmul %122, %123, %cst_174 {dimension_numbers = #tpu.dot_dimension_numbers<[1], [0], [0], [1], [0, 0, 1, 1], [], []>} : vector<16x24xf32>, vector<24x8xf32>, vector<16x8xf32> -> vector<16x8xf32>
    %c10_175 = arith.constant 10 : index
    %c0_176 = arith.constant 0 : index
    %125 = vector.load %arg3[%c10_175, %c0_176] : memref<16x16xf32, #tpu.memory_space<vmem>>, vector<1x8xf32>
    %c11 = arith.constant 11 : index
    %c0_177 = arith.constant 0 : index
    %126 = vector.load %arg3[%c11, %c0_177] : memref<16x16xf32, #tpu.memory_space<vmem>>, vector<1x8xf32>
    %cst_178 = arith.constant 0.000000e+00 : f32
    %127 = vector.broadcast %cst_178 : f32 to vector<16x8xf32>
    %128 = arith.maximumf %124, %127 : vector<16x8xf32>
    %129 = vector.broadcast %125 : vector<1x8xf32> to vector<16x8xf32>
    %130 = arith.mulf %128, %129 : vector<16x8xf32>
    %131 = vector.broadcast %126 : vector<1x8xf32> to vector<16x8xf32>
    %132 = arith.addf %130, %131 : vector<16x8xf32>
    %133 = vector.shape_cast %132 : vector<16x8xf32> to vector<1x16x8xf32>
    %c0_179 = arith.constant 0 : index
    %c0_180 = arith.constant 0 : index
    %c0_181 = arith.constant 0 : index
    %134 = vector.load %arg6[%c0_179, %c0_180, %c0_181] : memref<1x16x16xf32, #tpu.memory_space<vmem>>, vector<1x16x8xf32>
    tpu.vector_store %arg6[%c0_179, %c0_180, %c0_181], %133 {strides = array<i32>} : memref<1x16x16xf32, #tpu.memory_space<vmem>>, vector<1x16x8xf32>,
    %c0_182 = arith.constant 0 : index
    %c0_183 = arith.constant 0 : index
    %c0_184 = arith.constant 0 : index
    %135 = tpu.strided_load %arg6[%c0_182, %c0_183, %c0_184] {strides = array<i32: 1, 2, 1>} : memref<1x16x16xf32, #tpu.memory_space<vmem>>, vector<1x8x8xf32>
    %c0_185 = arith.constant 0 : index
    %c1_186 = arith.constant 1 : index
    %c0_187 = arith.constant 0 : index
    %136 = tpu.strided_load %arg6[%c0_185, %c1_186, %c0_187] {strides = array<i32: 1, 2, 1>} : memref<1x16x16xf32, #tpu.memory_space<vmem>>, vector<1x8x8xf32>
    %137 = arith.addf %135, %136 : vector<1x8x8xf32>
    %cst_188 = arith.constant 5.000000e-01 : f32
    %138 = vector.broadcast %cst_188 : f32 to vector<1x8x8xf32>
    %139 = arith.mulf %137, %138 : vector<1x8x8xf32>
    %cst_189 = arith.constant 0.000000e+00 : f32
    %140 = vector.broadcast %cst_189 : f32 to vector<1x1x8xf32>
    %c0_190 = arith.constant 0 : index
    %c7_191 = arith.constant 7 : index
    %c0_192 = arith.constant 0 : index
    %141 = vector.load %arg5[%c0_190, %c7_191, %c0_192] : memref<1x48x16xf32, #tpu.memory_space<vmem>>, vector<1x1x8xf32>
    tpu.vector_store %arg5[%c0_190, %c7_191, %c0_192], %140 {strides = array<i32>} : memref<1x48x16xf32, #tpu.memory_space<vmem>>, vector<1x1x8xf32>,
    %c0_193 = arith.constant 0 : index
    %c16_194 = arith.constant 16 : index
    %c0_195 = arith.constant 0 : index
    %142 = vector.load %arg5[%c0_193, %c16_194, %c0_195] : memref<1x48x16xf32, #tpu.memory_space<vmem>>, vector<1x1x8xf32>
    tpu.vector_store %arg5[%c0_193, %c16_194, %c0_195], %140 {strides = array<i32>} : memref<1x48x16xf32, #tpu.memory_space<vmem>>, vector<1x1x8xf32>,
    %c0_196 = arith.constant 0 : index
    %c8_197 = arith.constant 8 : index
    %c0_198 = arith.constant 0 : index
    %143 = vector.load %arg5[%c0_196, %c8_197, %c0_198] : memref<1x48x16xf32, #tpu.memory_space<vmem>>, vector<1x8x8xf32>
    tpu.vector_store %arg5[%c0_196, %c8_197, %c0_198], %139 {strides = array<i32>} : memref<1x48x16xf32, #tpu.memory_space<vmem>>, vector<1x8x8xf32>,
    %c0_199 = arith.constant 0 : index
    %c7_200 = arith.constant 7 : index
    %c0_201 = arith.constant 0 : index
    %144 = vector.load %arg5[%c0_199, %c7_200, %c0_201] : memref<1x48x16xf32, #tpu.memory_space<vmem>>, vector<1x8x8xf32>
    %c0_202 = arith.constant 0 : index
    %c8_203 = arith.constant 8 : index
    %c0_204 = arith.constant 0 : index
    %145 = vector.load %arg5[%c0_202, %c8_203, %c0_204] : memref<1x48x16xf32, #tpu.memory_space<vmem>>, vector<1x8x8xf32>
    %c0_205 = arith.constant 0 : index
    %c9_206 = arith.constant 9 : index
    %c0_207 = arith.constant 0 : index
    %146 = vector.load %arg5[%c0_205, %c9_206, %c0_207] : memref<1x48x16xf32, #tpu.memory_space<vmem>>, vector<1x8x8xf32>
    %147 = tpu.concatenate %144, %145, %146 in 2 : vector<1x8x8xf32>, vector<1x8x8xf32>, vector<1x8x8xf32> -> vector<1x8x24xf32>
    %148 = vector.shape_cast %147 : vector<1x8x24xf32> to vector<8x24xf32>
    %c240 = arith.constant 240 : index
    %c0_208 = arith.constant 0 : index
    %149 = vector.load %arg2[%c240, %c0_208] : memref<312x16xf32, #tpu.memory_space<vmem>>, vector<24x16xf32>
    %cst_209 = arith.constant dense<0.000000e+00> : vector<8x16xf32>
    %150 = tpu.matmul %148, %149, %cst_209 {dimension_numbers = #tpu.dot_dimension_numbers<[1], [0], [0], [1], [0, 0, 1, 1], [], []>} : vector<8x24xf32>, vector<24x16xf32>, vector<8x16xf32> -> vector<8x16xf32>
    %c12 = arith.constant 12 : index
    %c0_210 = arith.constant 0 : index
    %151 = vector.load %arg3[%c12, %c0_210] : memref<16x16xf32, #tpu.memory_space<vmem>>, vector<1x16xf32>
    %c13 = arith.constant 13 : index
    %c0_211 = arith.constant 0 : index
    %152 = vector.load %arg3[%c13, %c0_211] : memref<16x16xf32, #tpu.memory_space<vmem>>, vector<1x16xf32>
    %cst_212 = arith.constant 0.000000e+00 : f32
    %153 = vector.broadcast %cst_212 : f32 to vector<8x16xf32>
    %154 = arith.maximumf %150, %153 : vector<8x16xf32>
    %155 = vector.broadcast %151 : vector<1x16xf32> to vector<8x16xf32>
    %156 = arith.mulf %154, %155 : vector<8x16xf32>
    %157 = vector.broadcast %152 : vector<1x16xf32> to vector<8x16xf32>
    %158 = arith.addf %156, %157 : vector<8x16xf32>
    %159 = vector.shape_cast %158 : vector<8x16xf32> to vector<1x8x16xf32>
    %cst_213 = arith.constant 0.000000e+00 : f32
    %160 = vector.broadcast %cst_213 : f32 to vector<1x1x16xf32>
    %c0_214 = arith.constant 0 : index
    %c7_215 = arith.constant 7 : index
    %c0_216 = arith.constant 0 : index
    %161 = vector.load %arg5[%c0_214, %c7_215, %c0_216] : memref<1x48x16xf32, #tpu.memory_space<vmem>>, vector<1x1x16xf32>
    tpu.vector_store %arg5[%c0_214, %c7_215, %c0_216], %160 {strides = array<i32>} : memref<1x48x16xf32, #tpu.memory_space<vmem>>, vector<1x1x16xf32>,
    %c0_217 = arith.constant 0 : index
    %c16_218 = arith.constant 16 : index
    %c0_219 = arith.constant 0 : index
    %162 = vector.load %arg5[%c0_217, %c16_218, %c0_219] : memref<1x48x16xf32, #tpu.memory_space<vmem>>, vector<1x1x16xf32>
    tpu.vector_store %arg5[%c0_217, %c16_218, %c0_219], %160 {strides = array<i32>} : memref<1x48x16xf32, #tpu.memory_space<vmem>>, vector<1x1x16xf32>,
    %c0_220 = arith.constant 0 : index
    %c8_221 = arith.constant 8 : index
    %c0_222 = arith.constant 0 : index
    %163 = vector.load %arg5[%c0_220, %c8_221, %c0_222] : memref<1x48x16xf32, #tpu.memory_space<vmem>>, vector<1x8x16xf32>
    tpu.vector_store %arg5[%c0_220, %c8_221, %c0_222], %159 {strides = array<i32>} : memref<1x48x16xf32, #tpu.memory_space<vmem>>, vector<1x8x16xf32>,
    %c0_223 = arith.constant 0 : index
    %c7_224 = arith.constant 7 : index
    %c0_225 = arith.constant 0 : index
    %164 = vector.load %arg5[%c0_223, %c7_224, %c0_225] : memref<1x48x16xf32, #tpu.memory_space<vmem>>, vector<1x8x16xf32>
    %c0_226 = arith.constant 0 : index
    %c8_227 = arith.constant 8 : index
    %c0_228 = arith.constant 0 : index
    %165 = vector.load %arg5[%c0_226, %c8_227, %c0_228] : memref<1x48x16xf32, #tpu.memory_space<vmem>>, vector<1x8x16xf32>
    %c0_229 = arith.constant 0 : index
    %c9_230 = arith.constant 9 : index
    %c0_231 = arith.constant 0 : index
    %166 = vector.load %arg5[%c0_229, %c9_230, %c0_231] : memref<1x48x16xf32, #tpu.memory_space<vmem>>, vector<1x8x16xf32>
    %167 = tpu.concatenate %164, %165, %166 in 2 : vector<1x8x16xf32>, vector<1x8x16xf32>, vector<1x8x16xf32> -> vector<1x8x48xf32>
    %168 = vector.shape_cast %167 : vector<1x8x48xf32> to vector<8x48xf32>
    %c264 = arith.constant 264 : index
    %c0_232 = arith.constant 0 : index
    %169 = vector.load %arg2[%c264, %c0_232] : memref<312x16xf32, #tpu.memory_space<vmem>>, vector<48x16xf32>
    %cst_233 = arith.constant dense<0.000000e+00> : vector<8x16xf32>
    %170 = tpu.matmul %168, %169, %cst_233 {dimension_numbers = #tpu.dot_dimension_numbers<[1], [0], [0], [1], [0, 0, 1, 1], [], []>} : vector<8x48xf32>, vector<48x16xf32>, vector<8x16xf32> -> vector<8x16xf32>
    %c14 = arith.constant 14 : index
    %c0_234 = arith.constant 0 : index
    %171 = vector.load %arg3[%c14, %c0_234] : memref<16x16xf32, #tpu.memory_space<vmem>>, vector<1x16xf32>
    %c15 = arith.constant 15 : index
    %c0_235 = arith.constant 0 : index
    %172 = vector.load %arg3[%c15, %c0_235] : memref<16x16xf32, #tpu.memory_space<vmem>>, vector<1x16xf32>
    %cst_236 = arith.constant 0.000000e+00 : f32
    %173 = vector.broadcast %cst_236 : f32 to vector<8x16xf32>
    %174 = arith.maximumf %170, %173 : vector<8x16xf32>
    %175 = vector.broadcast %171 : vector<1x16xf32> to vector<8x16xf32>
    %176 = arith.mulf %174, %175 : vector<8x16xf32>
    %177 = vector.broadcast %172 : vector<1x16xf32> to vector<8x16xf32>
    %178 = arith.addf %176, %177 : vector<8x16xf32>
    %179 = vector.shape_cast %178 : vector<8x16xf32> to vector<1x8x16xf32>
    %c0_237 = arith.constant 0 : index
    %c0_238 = arith.constant 0 : index
    %c0_239 = arith.constant 0 : index
    %180 = vector.load %arg6[%c0_237, %c0_238, %c0_239] : memref<1x16x16xf32, #tpu.memory_space<vmem>>, vector<1x8x16xf32>
    tpu.vector_store %arg6[%c0_237, %c0_238, %c0_239], %179 {strides = array<i32>} : memref<1x16x16xf32, #tpu.memory_space<vmem>>, vector<1x8x16xf32>,
    %c0_240 = arith.constant 0 : index
    %c0_241 = arith.constant 0 : index
    %c0_242 = arith.constant 0 : index
    %181 = tpu.strided_load %arg6[%c0_240, %c0_241, %c0_242] {strides = array<i32: 1, 2, 1>} : memref<1x16x16xf32, #tpu.memory_space<vmem>>, vector<1x4x16xf32>
    %c0_243 = arith.constant 0 : index
    %c1_244 = arith.constant 1 : index
    %c0_245 = arith.constant 0 : index
    %182 = tpu.strided_load %arg6[%c0_243, %c1_244, %c0_245] {strides = array<i32: 1, 2, 1>} : memref<1x16x16xf32, #tpu.memory_space<vmem>>, vector<1x4x16xf32>
    %183 = arith.addf %181, %182 : vector<1x4x16xf32>
    %cst_246 = arith.constant 5.000000e-01 : f32
    %184 = vector.broadcast %cst_246 : f32 to vector<1x4x16xf32>
    %185 = arith.mulf %183, %184 : vector<1x4x16xf32>
    %186 = tpu.concatenate %90, %185 in 2 : vector<1x4x16xf32>, vector<1x4x16xf32> -> vector<1x4x32xf32>
    %c0_247 = arith.constant 0 : index
    %c0_248 = arith.constant 0 : index
    %c0_249 = arith.constant 0 : index
    %187 = vector.load %arg4[%c0_247, %c0_248, %c0_249] : memref<1x4x32xf32, #tpu.memory_space<vmem>>, vector<1x4x32xf32>
    tpu.vector_store %arg4[%c0_247, %c0_248, %c0_249], %186 {strides = array<i32>} : memref<1x4x32xf32, #tpu.memory_space<vmem>>, vector<1x4x32xf32>,
    return
  }
  func.func @transform_0(%arg0: i32) -> (i32, i32, i32) {
    %c0_i32 = arith.constant 0 : i32
    %c0_i32_0 = arith.constant 0 : i32
    %c0_i32_1 = arith.constant 0 : i32
    return %arg0, %c0_i32, %c0_i32_0 : i32, i32, i32
  }
  func.func @transform_1(%arg0: i32) -> (i32, i32) {
    %c0_i32 = arith.constant 0 : i32
    %c0_i32_0 = arith.constant 0 : i32
    %c0_i32_1 = arith.constant 0 : i32
    return %c0_i32, %c0_i32_0 : i32, i32
  }
  func.func @transform_2(%arg0: i32) -> (i32, i32) {
    %c0_i32 = arith.constant 0 : i32
    %c0_i32_0 = arith.constant 0 : i32
    %c0_i32_1 = arith.constant 0 : i32
    return %c0_i32, %c0_i32_0 : i32, i32
  }
  func.func @transform_3(%arg0: i32) -> (i32, i32, i32) {
    %c0_i32 = arith.constant 0 : i32
    %c0_i32_0 = arith.constant 0 : i32
    %c0_i32_1 = arith.constant 0 : i32
    return %arg0, %c0_i32, %c0_i32_0 : i32, i32, i32
  }
}

</mosaic_0001>

<bundles_post_ra>
// kernel: pac_forward.1
= control target key start
LH: loop header
LB: loop body
LE: loop exit
PB: predicated region body
PF: predicated region fallthrough
CT: control target
= control target key end

     0   :  { %8 = vsyncpa [#allocation5], 0  ;;  %s1610_s0 = inlined_call_operand.vmem [shape: f32[2,32,12], index: 0, kind: input, shape index: {}]   ;;  %s1611_s1 = inlined_call_operand.vmem [shape: f32[312,16], index: 1, kind: input, shape index: {}]   ;;  %s1612_s2 = inlined_call_operand.vmem [shape: f32[16,16], index: 2, kind: input, shape index: {}]   ;;  %s1613_s3 = inlined_call_operand.hbm [shape: f32[2,4,32], index: 3, kind: output, shape index: {}]  }
   0x1   :  { %10 = vsyncpa [#allocation5 + $0x1], 0  ;;  %s1171_s12 = smov 0   ;;  %s1173_s13 = smov 0  }
   0x2   :  { %s1175_s14 = smov 0   ;;  %s1177_s15 = smov 0  }
   0x3 LB: > { %s1192_s16 = sadd.s32 4294967295, %s1141_s15   ;;  %s978_s17 = sadd.s32 4294967294, %s1141_s15   ;;  %s1141_s15 = sphi %s1177_s15, %s1619_s15   ;;  %s1137_s14 = sphi %s1175_s14, %s1618_s14   ;;  %s1133_s13 = sphi %s1173_s13, %s1617_s13   ;;  %s1129_s12 = sphi %s1171_s12, %s1616_s12  }
   0x4   : > { %s1196_s18 = sadd.s32 1, %s1141_s15   ;;  %s91_s19 = sadd.s32 1, %s1137_s14 }
   0x5   : > { %s88_s20 = ssub.s32 %s1141_s15, %s1196_s18  ;;  %p101_p0 = scmp.ne.s32.totalorder %s1137_s14, %s1133_s13 }
   0x6   : > { %p89_p1 = scmp.eq.s32.totalorder %s88_s20, 0  ;;  %p102_p2 = scmp.eq.s32.totalorder %s1192_s16, 1 }
   0x7   : > { %p107_p3 = scmp.ne.s32.totalorder %s1133_s13, %s1129_s12  ;;  %p108_p4 = scmp.eq.s32.totalorder %s978_s17, 1 }
   0x8   : > { %s1207_s21 = scalar_select %p89_p1, %s1137_s14, %s91_s19  }
   0x9   : > { %p1209_p5 = por %p102_p2, %p101_p0  ;;  %p1213_p6 = por %p108_p4, %p107_p3 }
   0xa   : > { %p981_p7 = scmp.ge.s32.totalorder %s1141_s15, 1  ;;  %p140_p8 = scmp.lt.s32.totalorder %s1141_s15, 3 }
   0xc   : > { %p141_p9 = pnand %p981_p7, %p140_p8 }
   0xd   : > { %p164_p10 = scmp.lt.s32.totalorder (!%p141_p9), %s1192_s16, 1  ;;  %s1144_s29 = smov (!%p141_p9), 12  }
   0xe   : > { %144 = sbr.rel (%p141_p9) target bundleno = 2058 (0x80a), region = 32  ;;  %s1145_s30 = smov (!%p141_p9), 24  }
   0xf   : > { %s1146_s27 = smov (!%p141_p9), 16   ;;  %s1148_s4 = smov (!%p141_p9), 32  }
  0x10   : > { %s1149_s17 = smov (!%p141_p9), 36   ;;  %s1150_s19 = smov (!%p141_p9), 48  }
  0x11   : > { %s1004_s20 = sshll.u32 (!%p141_p9), %s1192_s16, 2  ;;  %s1099_s9 = scalar_lea.hbm (!%p141_p9), %s1613_s3, 8 }
  0x12   : > { %s914_s26 = scalar_lea.hbm (!%p141_p9), %s1613_s3, %s1004_s20 }
  0x13   : > { %vm173_vm0 = vcmask 90112   ;;  %v1143_v0 = vmov 0.0   ;;  %s165_s24 = scalar_select %p164_p10, %s1192_s16, 1  ;;  %vm176_vm1 = vcmask 97280   ;;  %vm301_vm2 = vcmask 58368   ;;  %v237_v15 = vld [vmem:[%s1611_s1 + $0x18] sm:$0xff] }
  0x14   : > { %174 = vst.msk [vmem:[#allocation2 + $0x7] sm:$0x1] %vm173_vm0, %v1143_v0  ;;  %v238_v14 = vld [vmem:[%s1611_s1 + $0x20] sm:$0xf]  ;;  %vm252_vm3 = vcmask 1043456   ;;  %v236_v16 = vld [vmem:[%s1611_s1 + $0x10] sm:$0xff] }
  0x15   : > { %175 = vst.msk [vmem:[#allocation2 + $0x28] sm:$0x1] %vm173_vm0, %v1143_v0  ;;  %s1007_s25 = sshll.u32 %s165_s24, 5  ;;  %985 = vmatpush.msk.msra.mxu0 %vm252_vm3, %v238_v14  ;;  %v235_v17 = vld [vmem:[%s1611_s1 + $0x8] sm:$0xff]  ;;  %v234_v18 = vld [vmem:[%s1611_s1] sm:$0xff]  ;;  %vm229_vm4 = vcmask 195584  }
  0x16   : > { %s168_s28 = scalar_lea.vmem %s1610_s0, %s1007_s25  ;;  %vm239_vm5 = vcmask 293888   ;;  %v1063_v38 = vld [vmem:[%s1612_s2] ss:$0 sm:$0xff]  ;;  %v1064_v41 = vld [vmem:[%s1612_s2 + $0x1] ss:$0 sm:$0xff]  ;;  %vm304_vm6 = vcmask 64512  }
  0x17   : > { %v1226_v1 = vld [vmem:[%s168_s28] sm:$0xff]  ;;  %v1228_v2 = vld [vmem:[%s168_s28 + $0x8] sm:$0xff]  ;;  %v1230_v3 = vld [vmem:[%s168_s28 + $0x10] sm:$0xff]  ;;  %268 = vmatpush.msra.mxu0 %v237_v15  ;;  %vm534_vm7 = vcmask 91136   ;;  %vm363_vm8 = vcmask 130048   ;;  %vm368_vm9 = vcmask 261120  }
  0x18   : > { %177 = vst.msk [vmem:[#allocation2 + $0x8] sm:$0xff] %vm176_vm1, %v1226_v1  ;;  %v1234_v4 = vld [vmem:[%s168_s28 + $0x18] sm:$0xff]  ;;  %s1147_s28 = smov 8   ;;  %vm376_vm10 = vcmask 326656   ;;  %vm422_vm11 = vcmask 57344   ;;  %vm472_vm12 = vcmask 122880  }
  0x19   : > { %178 = vst.msk [vmem:[#allocation2 + $0x10] sm:$0xff] %vm176_vm1, %v1228_v2  ;;  %269 = vmatpush.msra.mxu0 %v236_v16  ;;  %vm495_vm13 = vcmask 392192   ;;  %vm649_vm14 = vcmask 490496   ;;  %s918_s6 = sshll.u32 %s914_s26, 4  ;;  %vm901_vm15 = vcmask 257024   ;;  %s919_s6 = int_to_ptr.hbm [resolvable:$true] %s918_s6 }
  0x1a   : > { %179 = vst.msk [vmem:[#allocation2 + $0x18] sm:$0xff] %vm176_vm1, %v1230_v3  ;;  %s1093_s16 = sshra.s32 %s919_s6, 4  ;;  %s1094_s16 = int_to_ptr.hbm [resolvable:$true] %s1093_s16 }
  0x1b   : > { %180 = vst.msk [vmem:[#allocation2 + $0x20] sm:$0xff] %vm176_vm1, %v1234_v4  ;;  %270 = vmatpush.msra.mxu0 %v235_v17  ;;  %s1095_s7 = scalar_lea.hbm %s1094_s16, 4  ;;  %p1100_p0 = scmp.lt.s32.totalorder %s1094_s16, %s1613_s3 }
  0x1c   : > { %p1096_p11 = scmp.ne.s32.totalorder %s1094_s16, %s1095_s7  ;;  %p1101_p1 = scmp.lt.s32.totalorder %s1099_s9, %s1095_s7 }
  0x1d   : > { %271 = vmatpush.msra.mxu0 %v234_v18 }
  0x1e   : > { %p1097_p12 = pnand %p1096_p11, %p1209_p5  ;;  %p1102_p2 = por %p1101_p1, %p1100_p0 }
  0x1f   : > { %v185_v5 = vld [vmem:[#allocation2 + $0x8] sm:$0xff] }
  0x20   : > { %v181_v6 = vld [vmem:[#allocation2 + $0x7] sm:$0xff]  ;;  %197 = vrot.lane.b32.xlu0 %v185_v5, %s1144_s29  ;;  %v186_v7 = vld [vmem:[#allocation2 + $0x10] sm:$0xff]  ;;  %p1098_p13 = pneg %p1097_p12 }
  0x21   : > { %302 = vst.msk [vmem:[#allocation2 + $0x6] sm:$0x3] %vm301_vm2, %v1143_v0  ;;  %199 = vrot.lane.b32.xlu1 %v186_v7, %s1144_s29  ;;  %v187_v8 = vld [vmem:[#allocation2 + $0x18] sm:$0xff]  ;;  %v189_v10 = vld [vmem:[#allocation2 + $0x9] sm:$0xff]  ;;  %v374_v7 = vld [vmem:[%s1611_s1 + $0x40] sm:$0xff] }
  0x22   : > { %v192_v9 = vld [vmem:[#allocation2 + $0x21] sm:$0xff]  ;;  %201 = vrot.lane.b32.xlu2 %v187_v8, %s1144_s29  ;;  %v190_v11 = vld [vmem:[#allocation2 + $0x11] sm:$0xff]  ;;  %v191_v12 = vld [vmem:[#allocation2 + $0x19] sm:$0xff]  ;;  %p1103_p3 = pnand %p1102_p2, %p1098_p13 }
  0x23   : > { %303 = vst.msk [vmem:[#allocation2 + $0x28] sm:$0x3] %vm301_vm2, %v1143_v0  ;;  %v188_v13 = vld [vmem:[#allocation2 + $0x20] sm:$0xff]  ;;  %v182_v24 = vld [vmem:[#allocation2 + $0xf] sm:$0xff]  ;;  %v183_v29 = vld [vmem:[#allocation2 + $0x17] sm:$0xff] }
  0x24   : > { %v184_v33 = vld [vmem:[#allocation2 + $0x1f] sm:$0xff] }
  0x25   : > { %v373_v8 = vld [vmem:[%s1611_s1 + $0x38] sm:$0xff] }
  0x28   : > { %213 = vrot.lane.b32.xlu0 %v189_v10, %s1145_s30 }
  0x29   : > { %215 = vrot.lane.b32.xlu1 %v190_v11, %s1145_s30 }
  0x2a   : > { %217 = vrot.lane.b32.xlu2 %v191_v12, %s1145_s30 }
  0x30   : > { %203 = vrot.lane.b32.xlu0 %v188_v13, %s1144_s29 }
  0x31   : > { %219 = vrot.lane.b32.xlu1 %v192_v9, %s1145_s30 }
  0x7c   : > { %v202_v25 = vpop.permute.xlu2 %201 }
  0x7d   : > { %v227_v30 = vsel %vm176_vm1, %v183_v29, %v202_v25  ;;  %v1066_v29 = vld [vmem:[%s1612_s2 + $0x3] ss:$0 sm:$0xff] }
  0x84   : > { %v218_v31 = vpop.permute.xlu2 %217 }
  0x85   : > { %v232_v32 = vsel %vm229_vm4, %v227_v30, %v218_v31 }
  0x92   : > { %v198_v19 = vpop.permute.xlu0 %197 }
  0x93   : > { %v200_v20 = vpop.permute.xlu1 %199  ;;  %v225_v21 = vsel %vm176_vm1, %v181_v6, %v198_v19  ;;  %v375_v6 = vld [vmem:[%s1611_s1 + $0x48] sm:$0xff] }
  0x94   : > { %v226_v26 = vsel %vm176_vm1, %v182_v24, %v200_v20  ;;  %394 = vmatpush.msra.mxu1 %v375_v6 }
  0x96   : > { %395 = vmatpush.msra.mxu1 %v374_v7 }
  0x98   : > { %396 = vmatpush.msra.mxu1 %v373_v8 }
  0x9a   : > { %v214_v22 = vpop.permute.xlu0 %213 }
  0x9b   : > { %v230_v23 = vsel %vm229_vm4, %v225_v21, %v214_v22  ;;  %v216_v27 = vpop.permute.xlu1 %215 }
  0x9c   : > { %986 = vmatmul.msk.f32.vlgmr.msra.gmra.mxu0 %vm239_vm5, %v230_v23  ;;  %v231_v28 = vsel %vm229_vm4, %v226_v26, %v216_v27  ;;  %v1065_v26 = vld [vmem:[%s1612_s2 + $0x2] ss:$0 sm:$0xff] }
  0xa2   : > { %v204_v34 = vpop.permute.xlu0 %203 }
  0xa3   : > { %v228_v35 = vsel %vm176_vm1, %v184_v33, %v204_v34  ;;  %v220_v36 = vpop.permute.xlu1 %219 }
  0xa4   : > { %987 = vmatmul.msk.f32.gmra.mxu0 %vm239_vm5, %v231_v28  ;;  %v233_v37 = vsel %vm229_vm4, %v228_v35, %v220_v36 }
  0xac   : > { %988 = vmatmul.msk.f32.gmra.mxu0 %vm239_vm5, %v232_v32 }
  0xb4   : > { %989 = vmatmul.msk.f32.gmra.mxu0 %vm239_vm5, %v233_v37 }
 0x119   : > { %v273_v39 = vpop.f32.mrf.mxu0 }
 0x11a   : > { %v287_v40 = vmax.f32 %v273_v39, 0.0 }
 0x11c   : > { %v292_v42 = vmul.f32 %v1063_v38, %v287_v40 }
 0x11e   : > { %v297_v43 = vadd.f32 %v1064_v41, %v292_v42  ;;  %v441_v42 = vld [vmem:[%s1611_s1 + $0x60] sm:$0xff] }
 0x11f   : > { %458 = vmatpush.msra.mxu2 %v441_v42 }
 0x120   : > { %305 = vst.msk [vmem:[#allocation2 + $0x8] sm:$0xff] %vm304_vm6, %v297_v43  ;;  %v440_v43 = vld [vmem:[%s1611_s1 + $0x58] sm:$0xff] }
 0x121   : > { %v276_v44 = vpop.f32.mrf.mxu0  ;;  %459 = vmatpush.msra.mxu2 %v440_v43 }
 0x122   : > { %v288_v45 = vmax.f32 %v276_v44, 0.0  ;;  %v439_v44 = vld [vmem:[%s1611_s1 + $0x50] sm:$0xff] }
 0x123   : > { %460 = vmatpush.msra.mxu2 %v439_v44 }
 0x124   : > { %v293_v46 = vmul.f32 %v1063_v38, %v288_v45 }
 0x126   : > { %v298_v47 = vadd.f32 %v1064_v41, %v293_v46 }
 0x128   : > { %306 = vst.msk [vmem:[#allocation2 + $0x10] sm:$0xff] %vm304_vm6, %v298_v47 }
 0x129   : > { %v279_v48 = vpop.f32.mrf.mxu0 }
 0x12a   : > { %v289_v49 = vmax.f32 %v279_v48, 0.0 }
 0x12c   : > { %v294_v50 = vmul.f32 %v1063_v38, %v289_v49 }
 0x12e   : > { %v299_v51 = vadd.f32 %v1064_v41, %v294_v50 }
 0x12f   : > { %v322_v52 = vld [vmem:[#allocation2 + $0x9] ss:$2 sm:$0xff]  ;;  %v318_v53 = vld [vmem:[#allocation2 + $0x8] ss:$2 sm:$0xff] }
 0x130   : > { %v314_v54 = vld [vmem:[#allocation2 + $0x7] ss:$2 sm:$0xff]  ;;  %307 = vst.msk [vmem:[#allocation2 + $0x18] sm:$0xff] %vm304_vm6, %v299_v51  ;;  %347 = vrot.lane.b32.xlu1 %v322_v52, %s1145_s30  ;;  %339 = vrot.lane.b32.xlu0 %v318_v53, %s1146_s27  ;;  %v310_v10 = vld [vmem:[#allocation2 + $0x6] ss:$2 sm:$0xff] }
 0x131   : > { %331 = vrot.lane.b32.xlu2 %v314_v54, %s1147_s28  ;;  %v282_v55 = vpop.f32.mrf.mxu0  ;;  %423 = vst.msk [vmem:[#allocation2 + $0x7] sm:$0x1] %vm422_vm11, %v1143_v0  ;;  %v1067_v52 = vld [vmem:[%s1612_s2 + $0x4] ss:$0 sm:$0xff] }
 0x132   : > { %v290_v56 = vmax.f32 %v282_v55, 0.0  ;;  %v1068_v55 = vld [vmem:[%s1612_s2 + $0x5] ss:$0 sm:$0xff] }
 0x134   : > { %v295_v57 = vmul.f32 %v1063_v38, %v290_v56 }
 0x136   : > { %v300_v58 = vadd.f32 %v1064_v41, %v295_v57 }
 0x137   : > { %v326_v59 = vld [vmem:[#allocation2 + $0xa] ss:$2 sm:$0xff] }
 0x138   : > { %308 = vst.msk [vmem:[#allocation2 + $0x20] sm:$0xff] %vm304_vm6, %v300_v58 }
 0x139   : > { %355 = vrot.lane.b32.xlu2 %v326_v59, %s1148_s4  ;;  %424 = vst.msk [vmem:[#allocation2 + $0x10] sm:$0x1] %vm422_vm11, %v1143_v0 }
 0x13f   : > { %v324_v60 = vld [vmem:[#allocation2 + $0x19] ss:$2 sm:$0xff]  ;;  %v320_v61 = vld [vmem:[#allocation2 + $0x18] ss:$2 sm:$0xff] }
 0x140   : > { %v316_v62 = vld [vmem:[#allocation2 + $0x17] ss:$2 sm:$0xff]  ;;  %341 = vrot.lane.b32.xlu1 %v320_v61, %s1146_s27  ;;  %v328_v63 = vld [vmem:[#allocation2 + $0x1a] ss:$2 sm:$0xff] }
 0x141   : > { %333 = vrot.lane.b32.xlu0 %v316_v62, %s1147_s28  ;;  %349 = vrot.lane.b32.xlu2 %v324_v60, %s1145_s30  ;;  %536 = vst.msk [vmem:[#allocation2 + $0x28] sm:$0x3] %vm534_vm7, %v1143_v0  ;;  %v312_v5 = vld [vmem:[#allocation2 + $0x16] ss:$2 sm:$0xff] }
 0x142   : > { %539 = vst.msk [vmem:[#allocation2 + $0x18] sm:$0xff] %vm176_vm1, %v1230_v3  ;;  %v372_v3 = vld [vmem:[%s1611_s1 + $0x30] sm:$0xff] }
 0x143   : > { %540 = vst.msk [vmem:[#allocation2 + $0x20] sm:$0xff] %vm176_vm1, %v1234_v4  ;;  %v371_v4 = vld [vmem:[%s1611_s1 + $0x28] sm:$0xff]  ;;  %397 = vmatpush.msra.mxu1 %v372_v3 }
 0x145   : > { %398 = vmatpush.msra.mxu1 %v371_v4 }
 0x149   : > { %357 = vrot.lane.b32.xlu0 %v328_v63, %s1148_s4  ;;  %v551_v50 = vld [vmem:[#allocation2 + $0x18] sm:$0xff] }
 0x14a   : > { %v555_v49 = vld [vmem:[#allocation2 + $0x19] sm:$0xff]  ;;  %v560_v6 = vld [vmem:[#allocation2 + $0x22] sm:$0xff] }
 0x14b   : > { %v559_v51 = vld [vmem:[#allocation2 + $0x1a] sm:$0xff] }
 0x14c   : > { %v548_v8 = vld [vmem:[#allocation2 + $0x1f] sm:$0xff] }
 0x14d   : > { %v552_v4 = vld [vmem:[#allocation2 + $0x20] sm:$0xff] }
 0x151   : > { %601 = vrot.lane.b32.xlu0 %v555_v49, %s1149_s17  ;;  %v544_v49 = vld [vmem:[#allocation2 + $0x1e] sm:$0xff] }
 0x18b   : > { %v332_v9 = vpop.permute.xlu2 %331 }
 0x18c   : > { %v361_v11 = vsel %vm304_vm6, %v310_v10, %v332_v9 }
 0x193   : > { %v356_v15 = vpop.permute.xlu2 %355 }
 0x19b   : > { %v350_v22 = vpop.permute.xlu2 %349 }
 0x1a2   : > { %v348_v12 = vpop.permute.xlu1 %347  ;;  %v340_v13 = vpop.permute.xlu0 %339 }
 0x1a3   : > { %v364_v14 = vsel %vm363_vm8, %v361_v11, %v340_v13  ;;  %v647_v13 = vld [vmem:[%s1611_s1 + $0xc8] sm:$0xff] }
 0x1a4   : > { %v366_v16 = vsel %vm229_vm4, %v364_v14, %v348_v12  ;;  %v648_v12 = vld [vmem:[%s1611_s1 + $0xd0] sm:$0xf]  ;;  %v646_v14 = vld [vmem:[%s1611_s1 + $0xc0] sm:$0xff] }
 0x1a5   : > { %v369_v17 = vsel %vm368_vm9, %v366_v16, %v356_v15  ;;  %1008 = vmatpush.msk.msrb.mxu2 %vm252_vm3, %v648_v12  ;;  %994 = vmatpush.msk.msrb.mxu1 %vm252_vm3, %v648_v12  ;;  %v645_v15 = vld [vmem:[%s1611_s1 + $0xb8] sm:$0xff]  ;;  %v644_v16 = vld [vmem:[%s1611_s1 + $0xb0] sm:$0xff] }
 0x1a6   : > { %990 = vmatmul.msk.f32.vlgmr.msra.gmra.mxu1 %vm376_vm10, %v369_v17  ;;  %v643_v17 = vld [vmem:[%s1611_s1 + $0xa8] sm:$0xff] }
 0x1a7   : > { %1009 = vmatpush.msrb.mxu2 %v647_v13  ;;  %674 = vmatpush.msrb.mxu1 %v647_v13 }
 0x1a9   : > { %1010 = vmatpush.msrb.mxu2 %v646_v14  ;;  %675 = vmatpush.msrb.mxu1 %v646_v14 }
 0x1ab   : > { %1011 = vmatpush.msrb.mxu2 %v645_v15  ;;  %676 = vmatpush.msrb.mxu1 %v645_v15 }
 0x1ad   : > { %1012 = vmatpush.msrb.mxu2 %v644_v16  ;;  %677 = vmatpush.msrb.mxu1 %v644_v16  ;;  %v1071_v16 = vld [vmem:[%s1612_s2 + $0x6] ss:$0 sm:$0xff] }
 0x1af   : > { %1013 = vmatpush.msrb.mxu2 %v643_v17  ;;  %678 = vmatpush.msrb.mxu1 %v643_v17 }
 0x1b2   : > { %v342_v19 = vpop.permute.xlu1 %341 }
 0x1b3   : > { %v334_v18 = vpop.permute.xlu0 %333 }
 0x1b4   : > { %v362_v20 = vsel %vm304_vm6, %v312_v5, %v334_v18  ;;  %v556_v5 = vld [vmem:[#allocation2 + $0x21] sm:$0xff] }
 0x1b5   : > { %v365_v21 = vsel %vm363_vm8, %v362_v20, %v342_v19  ;;  %711 = vst.msk [vmem:[#allocation2 + $0x28] sm:$0x1] %vm422_vm11, %v1143_v0  ;;  %v642_v18 = vld [vmem:[%s1611_s1 + $0xa0] sm:$0xff]  ;;  %v641_v19 = vld [vmem:[%s1611_s1 + $0x98] sm:$0xff] }
 0x1b6   : > { %v367_v24 = vsel %vm229_vm4, %v365_v21, %v350_v22  ;;  %1014 = vmatpush.msrb.mxu2 %v642_v18  ;;  %679 = vmatpush.msrb.mxu1 %v642_v18  ;;  %v494_v21 = vld [vmem:[%s1611_s1 + $0x90] sm:$0xff] }
 0x1b7   : > { %509 = vmatpush.msra.mxu3 %v494_v21  ;;  %v1072_v21 = vld [vmem:[%s1612_s2 + $0x7] ss:$0 sm:$0xff] }
 0x1b8   : > { %1015 = vmatpush.msrb.mxu2 %v641_v19  ;;  %680 = vmatpush.msrb.mxu1 %v641_v19 }
 0x1bb   : > { %v358_v23 = vpop.permute.xlu0 %357 }
 0x1bc   : > { %v370_v25 = vsel %vm368_vm9, %v367_v24, %v358_v23 }
 0x1bd   : > { %991 = vmatmul.msk.f32.gmra.mxu1 %vm376_vm10, %v370_v25  ;;  %v493_v25 = vld [vmem:[%s1611_s1 + $0x88] sm:$0xff] }
 0x1be   : > { %510 = vmatpush.msra.mxu3 %v493_v25 }
 0x1c3   : > { %v602_v23 = vpop.permute.xlu0 %601 }
 0x223   : > { %v400_v27 = vpop.f32.mrf.mxu1 }
 0x224   : > { %v408_v28 = vmax.f32 %v400_v27, 0.0  ;;  %v491_v27 = vld [vmem:[%s1611_s1 + $0x78] sm:$0xff] }
 0x226   : > { %v411_v30 = vmul.f32 %v1065_v26, %v408_v28  ;;  %v490_v28 = vld [vmem:[%s1611_s1 + $0x70] sm:$0xff] }
 0x228   : > { %v414_v31 = vadd.f32 %v1066_v29, %v411_v30 }
 0x22a   : > { %416 = vst.msk [vmem:[#allocation3] sm:$0xff] %vm304_vm6, %v414_v31 }
 0x23a   : > { %v403_v32 = vpop.f32.mrf.mxu1 }
 0x23b   : > { %v409_v33 = vmax.f32 %v403_v32, 0.0  ;;  %v489_v32 = vld [vmem:[%s1611_s1 + $0x68] sm:$0xff] }
 0x23d   : > { %v412_v34 = vmul.f32 %v1065_v26, %v409_v33  ;;  %v492_v26 = vld [vmem:[%s1611_s1 + $0x80] sm:$0xff] }
 0x23e   : > { %511 = vmatpush.msra.mxu3 %v492_v26 }
 0x23f   : > { %v415_v35 = vadd.f32 %v1066_v29, %v412_v34 }
 0x240   : > { %512 = vmatpush.msra.mxu3 %v491_v27 }
 0x241   : > { %417 = vst.msk [vmem:[#allocation3 + $0x8] sm:$0xff] %vm304_vm6, %v415_v35 }
 0x242   : > { %513 = vmatpush.msra.mxu3 %v490_v28 }
 0x244   : > { %514 = vmatpush.msra.mxu3 %v489_v32  ;;  %v743_v32 = vld [vmem:[%s1611_s1 + $0xe0] sm:$0xff] }
 0x248   : > { %v418_v36 = vld [vmem:[#allocation3] ss:$2 sm:$0xff]  ;;  %v420_v37 = vld [vmem:[#allocation3 + $0x1] ss:$2 sm:$0xff] }
 0x249   : > { %v421_v38 = vmax.f32 %v418_v36, %v420_v37 }
 0x24b   : > { %425 = vst.msk [vmem:[#allocation2 + $0x8] sm:$0xff] %vm304_vm6, %v421_v38 }
 0x252   : > { %v428_v39 = vld [vmem:[#allocation2 + $0x9] sm:$0xff] }
 0x253   : > { %v427_v40 = vld [vmem:[#allocation2 + $0x8] sm:$0xff]  ;;  %434 = vrot.lane.b32.xlu2 %v428_v39, %s1146_s27  ;;  %474 = vst.msk [vmem:[#allocation2 + $0x10] sm:$0x1] %vm472_vm12, %v1143_v0 }
 0x254   : > { %430 = vrot.lane.b32.xlu1 %v427_v40, %s1147_s28  ;;  %v426_v41 = vld [vmem:[#allocation2 + $0x7] sm:$0xff] }
 0x255   : > { %473 = vst.msk [vmem:[#allocation2 + $0x7] sm:$0x1] %vm472_vm12, %v1143_v0 }
 0x25b   : > { %585 = vrot.lane.b32.xlu2 %v551_v50, %s1145_s30 }
 0x25c   : > { %617 = vrot.lane.b32.xlu1 %v559_v51, %s1150_s19 }
 0x2ad   : > { %v435_v46 = vpop.permute.xlu2 %434 }
 0x2b5   : > { %v586_v20 = vpop.permute.xlu2 %585 }
 0x2c6   : > { %v431_v45 = vpop.permute.xlu1 %430 }
 0x2c7   : > { %v437_v47 = vsel %vm304_vm6, %v426_v41, %v431_v45 }
 0x2c8   : > { %v438_v48 = vsel %vm363_vm8, %v437_v47, %v435_v46 }
 0x2c9   : > { %992 = vmatmul.msk.f32.vlgmr.msra.gmra.mxu2 %vm229_vm4, %v438_v48 }
 0x2ce   : > { %v618_v22 = vpop.permute.xlu1 %617 }
 0x34c   : > { %v462_v53 = vpop.f32.mrf.mxu2 }
 0x34d   : > { %v467_v54 = vmax.f32 %v462_v53, 0.0 }
 0x34f   : > { %v469_v56 = vmul.f32 %v1067_v52, %v467_v54 }
 0x351   : > { %v471_v57 = vadd.f32 %v1068_v55, %v469_v56 }
 0x353   : > { %475 = vst.msk [vmem:[#allocation2 + $0x8] sm:$0xff] %vm363_vm8, %v471_v57 }
 0x35a   : > { %v478_v58 = vld [vmem:[#allocation2 + $0x9] sm:$0xff] }
 0x35b   : > { %v1368_v59 = vld [vmem:[#allocation2 + $0x7] sm:$0xff]  ;;  %538 = vst.msk [vmem:[#allocation2 + $0x10] sm:$0xff] %vm176_vm1, %v1228_v2 }
 0x35c   : > { %v477_v60 = vld [vmem:[#allocation2 + $0x8] sm:$0xff]  ;;  %535 = vst.msk [vmem:[#allocation2 + $0x6] sm:$0x3] %vm534_vm7, %v1143_v0 }
 0x35d   : > { %537 = vst.msk [vmem:[#allocation2 + $0x8] sm:$0xff] %vm176_vm1, %v1226_v1 }
 0x362   : > { %v554_v61 = vld [vmem:[#allocation2 + $0x11] sm:$0xff] }
 0x363   : > { %v550_v62 = vld [vmem:[#allocation2 + $0x10] sm:$0xff]  ;;  %599 = vrot.lane.b32.xlu2 %v554_v61, %s1149_s17 }
 0x364   : > { %583 = vrot.lane.b32.xlu1 %v550_v62, %s1145_s30  ;;  %v546_v63 = vld [vmem:[#allocation2 + $0xf] sm:$0xff]  ;;  %v547_v2 = vld [vmem:[#allocation2 + $0x17] sm:$0xff]  ;;  %v545_v7 = vld [vmem:[#allocation2 + $0x7] sm:$0xff] }
 0x365   : > { %567 = vrot.lane.b32.xlu0 %v546_v63, %s1144_s29  ;;  %v558_v1 = vld [vmem:[#allocation2 + $0x12] sm:$0xff]  ;;  %v553_v3 = vld [vmem:[#allocation2 + $0x9] sm:$0xff] }
 0x366   : > { %v557_v9 = vld [vmem:[#allocation2 + $0xa] sm:$0xff]  ;;  %v543_v36 = vld [vmem:[#allocation2 + $0x16] sm:$0xff] }
 0x367   : > { %v549_v10 = vld [vmem:[#allocation2 + $0x8] sm:$0xff] }
 0x368   : > { %v1393_v11 = vld [vmem:[#allocation2 + $0x6] sm:$0xff]  ;;  %v542_v30 = vld [vmem:[#allocation2 + $0xe] sm:$0xff] }
 0x369   : > { %710 = vst.msk [vmem:[#allocation2 + $0x7] sm:$0x1] %vm422_vm11, %v1143_v0 }
 0x36b   : > { %565 = vrot.lane.b32.xlu2 %v545_v7, %s1144_s29 }
 0x36c   : > { %569 = vrot.lane.b32.xlu1 %v547_v2, %s1144_s29  ;;  %v1069_v2 = vld [vmem:[%s1612_s2 + $0x8] ss:$0 sm:$0xff] }
 0x36d   : > { %615 = vrot.lane.b32.xlu0 %v558_v1, %s1150_s19 }
 0x373   : > { %597 = vrot.lane.b32.xlu2 %v553_v3, %s1149_s17 }
 0x374   : > { %571 = vrot.lane.b32.xlu1 %v548_v8, %s1144_s29 }
 0x375   : > { %587 = vrot.lane.b32.xlu0 %v552_v4, %s1145_s30 }
 0x37b   : > { %603 = vrot.lane.b32.xlu2 %v556_v5, %s1149_s17  ;;  %s161_s17 = sand.u32 1, %s1133_s13  }
 0x37c   : > { %613 = vrot.lane.b32.xlu1 %v557_v9, %s1150_s19 }
 0x37d   : > { %581 = vrot.lane.b32.xlu0 %v549_v10, %s1145_s30 }
 0x383   : > { %484 = vrot.lane.b32.xlu2 %v478_v58, %s1148_s4 }
 0x384   : > { %480 = vrot.lane.b32.xlu1 %v477_v60, %s1146_s27 }
 0x385   : > { %619 = vrot.lane.b32.xlu0 %v560_v6, %s1150_s19  ;;  %s982_s19 = sshll.u32 %s161_s17, 2 }
 0x386   : > { %s163_s29 = scalar_lea.vmem [#allocation4], %s982_s19 }
 0x387   : > { %s916_s5 = sshll.u32 %s163_s29, 4  ;;  %s917_s5 = int_to_ptr.vmem [resolvable:$true] %s916_s5 }
 0x3bd   : > { %v600_v24 = vpop.permute.xlu2 %599 }
 0x3c5   : > { %v566_v33 = vpop.permute.xlu2 %565 }
 0x3c6   : > { %v625_v51 = vsel %vm176_vm1, %v1393_v11, %v566_v33  ;;  %v742_v33 = vld [vmem:[%s1611_s1 + $0xd8] sm:$0xff] }
 0x3cd   : > { %v598_v43 = vpop.permute.xlu2 %597 }
 0x3d5   : > { %v604_v48 = vpop.permute.xlu2 %603 }
 0x3d6   : > { %v584_v29 = vpop.permute.xlu1 %583 }
 0x3d7   : > { %v568_v31 = vpop.permute.xlu0 %567 }
 0x3d8   : > { %v626_v34 = vsel %vm176_vm1, %v542_v30, %v568_v31  ;;  %v744_v31 = vld [vmem:[%s1611_s1 + $0xe8] sm:$0xff] }
 0x3d9   : > { %v630_v35 = vsel %vm229_vm4, %v626_v34, %v584_v29  ;;  %764 = vmatpush.msrb.mxu3 %v744_v31 }
 0x3da   : > { %v634_v40 = vsel %vm239_vm5, %v630_v35, %v600_v24 }
 0x3db   : > { %765 = vmatpush.msrb.mxu3 %v743_v32 }
 0x3dd   : > { %v485_v60 = vpop.permute.xlu2 %484  ;;  %766 = vmatpush.msrb.mxu3 %v742_v33 }
 0x3de   : > { %v570_v37 = vpop.permute.xlu1 %569 }
 0x3df   : > { %v627_v38 = vsel %vm176_vm1, %v543_v36, %v570_v37  ;;  %v616_v39 = vpop.permute.xlu0 %615 }
 0x3e0   : > { %v638_v41 = vsel %vm495_vm13, %v634_v40, %v616_v39  ;;  %v631_v42 = vsel %vm229_vm4, %v627_v38, %v586_v20 }
 0x3e1   : > { %996 = vmatmul.msk.f32.vlgmr.msrb.gmra.mxu2 %vm649_vm14, %v638_v41  ;;  %v635_v44 = vsel %vm239_vm5, %v631_v42, %v602_v23 }
 0x3e2   : > { %v639_v47 = vsel %vm495_vm13, %v635_v44, %v618_v22 }
 0x3e6   : > { %v572_v45 = vpop.permute.xlu1 %571 }
 0x3e7   : > { %v588_v46 = vpop.permute.xlu0 %587  ;;  %v628_v54 = vsel %vm176_vm1, %v544_v49, %v572_v45 }
 0x3e8   : > { %v632_v57 = vsel %vm229_vm4, %v628_v54, %v588_v46  ;;  %v1074_v46 = vld [vmem:[%s1612_s2 + $0xb] ss:$0 sm:$0xff] }
 0x3e9   : > { %997 = vmatmul.msk.f32.gmra.mxu2 %vm649_vm14, %v639_v47  ;;  %v636_v63 = vsel %vm239_vm5, %v632_v57, %v604_v48 }
 0x3ee   : > { %v614_v50 = vpop.permute.xlu1 %613 }
 0x3ef   : > { %v582_v52 = vpop.permute.xlu0 %581 }
 0x3f0   : > { %v629_v53 = vsel %vm229_vm4, %v625_v51, %v582_v52 }
 0x3f1   : > { %v633_v55 = vsel %vm239_vm5, %v629_v53, %v598_v43  ;;  %v1073_v43 = vld [vmem:[%s1612_s2 + $0xa] ss:$0 sm:$0xff] }
 0x3f2   : > { %v637_v56 = vsel %vm495_vm13, %v633_v55, %v614_v50 }
 0x3f3   : > { %995 = vmatmul.msk.f32.vlgmr.msrb.gmra.mxu1 %vm649_vm14, %v637_v56 }
 0x3f6   : > { %v481_v58 = vpop.permute.xlu1 %480 }
 0x3f7   : > { %v487_v61 = vsel %vm363_vm8, %v1368_v59, %v481_v58  ;;  %v620_v62 = vpop.permute.xlu0 %619  ;;  %v1070_v59 = vld [vmem:[%s1612_s2 + $0x9] ss:$0 sm:$0xff] }
 0x3f8   : > { %v640_v5 = vsel %vm495_vm13, %v636_v63, %v620_v62  ;;  %v488_v6 = vsel %vm368_vm9, %v487_v61, %v485_v60  ;;  %v808_v63 = vld [vmem:[%s1611_s1 + $0x100] sm:$0xff] }
 0x3f9   : > { %998 = vmatmul.msk.f32.gmra.mxu2 %vm649_vm14, %v640_v5  ;;  %993 = vmatmul.msk.f32.vlgmr.msra.gmra.mxu3 %vm495_vm13, %v488_v6  ;;  %v807_v5 = vld [vmem:[%s1611_s1 + $0xf8] sm:$0xff]  ;;  %v806_v6 = vld [vmem:[%s1611_s1 + $0xf0] sm:$0xff] }
 0x3fa   : > { %825 = vmatpush.msra.mxu1 %v808_v63 }
 0x3fc   : > { %826 = vmatpush.msra.mxu1 %v807_v5 }
 0x3fe   : > { %827 = vmatpush.msra.mxu1 %v806_v6 }
 0x464   : > { %v685_v7 = vpop.f32.mrf.mxu2 }
 0x465   : > { %v697_v1 = vmax.f32 %v685_v7, 0.0 }
 0x467   : > { %v702_v8 = vmul.f32 %v1069_v2, %v697_v1 }
 0x469   : > { %v707_v3 = vadd.f32 %v1070_v59, %v702_v8  ;;  %v859_v8 = vld [vmem:[%s1611_s1 + $0x128] sm:$0xff] }
 0x46b   : > { %713 = vst.msk [vmem:[#allocation2 + $0x10] sm:$0xff] %vm304_vm6, %v707_v3  ;;  %v858_v3 = vld [vmem:[%s1611_s1 + $0x120] sm:$0xff] }
 0x46c   : > { %v688_v4 = vpop.f32.mrf.mxu2 }
 0x46d   : > { %v698_v9 = vmax.f32 %v688_v4, 0.0  ;;  %v857_v4 = vld [vmem:[%s1611_s1 + $0x118] sm:$0xff] }
 0x46f   : > { %v703_v10 = vmul.f32 %v1069_v2, %v698_v9  ;;  %v856_v9 = vld [vmem:[%s1611_s1 + $0x110] sm:$0xff] }
 0x470   : > { %v682_v11 = vpop.f32.mrf.mxu1 }
 0x471   : > { %v708_v12 = vadd.f32 %v1070_v59, %v703_v10  ;;  %v696_v13 = vmax.f32 %v682_v11, 0.0  ;;  %v1075_v10 = vld [vmem:[%s1612_s2 + $0xc] ss:$0 sm:$0xff] }
 0x473   : > { %714 = vst.msk [vmem:[#allocation2 + $0x18] sm:$0xff] %vm304_vm6, %v708_v12  ;;  %v701_v14 = vmul.f32 %v1069_v2, %v696_v13  ;;  %v1076_v13 = vld [vmem:[%s1612_s2 + $0xd] ss:$0 sm:$0xff] }
 0x475   : > { %v706_v15 = vadd.f32 %v1070_v59, %v701_v14 }
 0x477   : > { %712 = vst.msk [vmem:[#allocation2 + $0x8] sm:$0xff] %vm304_vm6, %v706_v15 }
 0x47c   : > { %v691_v17 = vpop.f32.mrf.mxu2  ;;  %v516_v18 = vpop.f32.mrf.mxu3 }
 0x47d   : > { %v699_v19 = vmax.f32 %v691_v17, 0.0  ;;  %v521_v20 = vmax.f32 %v516_v18, 0.0  ;;  %v855_v18 = vld [vmem:[%s1611_s1 + $0x108] sm:$0xff] }
 0x47e   : > { %v720_v22 = vld [vmem:[#allocation2 + $0x9] ss:$2 sm:$0xff]  ;;  %v718_v23 = vld [vmem:[#allocation2 + $0x8] ss:$2 sm:$0xff] }
 0x47f   : > { %v704_v24 = vmul.f32 %v1069_v2, %v699_v19  ;;  %v523_v25 = vmul.f32 %v1071_v16, %v521_v20  ;;  %732 = vrot.lane.b32.xlu1 %v720_v22, %s1146_s27  ;;  %724 = vrot.lane.b32.xlu0 %v718_v23, %s1147_s28  ;;  %791 = vst.msk [vmem:[#allocation2 + $0x10] sm:$0x1] %vm422_vm11, %v1143_v0  ;;  %v716_v26 = vld [vmem:[#allocation2 + $0x7] ss:$2 sm:$0xff] }
 0x480   : > { %790 = vst.msk [vmem:[#allocation2 + $0x7] sm:$0x1] %vm422_vm11, %v1143_v0 }
 0x481   : > { %v709_v27 = vadd.f32 %v1070_v59, %v704_v24  ;;  %v525_v28 = vadd.f32 %v1072_v21, %v523_v25  ;;  %v860_v59 = vld [vmem:[%s1611_s1 + $0x130] sm:$0xff]  ;;  %v1077_v24 = vld [vmem:[%s1612_s2 + $0xe] ss:$0 sm:$0xff] }
 0x482   : > { %874 = vmatpush.msra.mxu3 %v860_v59 }
 0x483   : > { %715 = vst.msk [vmem:[#allocation2 + $0x20] sm:$0xff] %vm304_vm6, %v709_v27  ;;  %v1078_v27 = vld [vmem:[%s1612_s2 + $0xf] ss:$0 sm:$0xff] }
 0x484   : > { %526 = vst.msk [vmem:[#allocation3] sm:$0xff] %vm363_vm8, %v525_v28  ;;  %875 = vmatpush.msra.mxu3 %v859_v8 }
 0x486   : > { %876 = vmatpush.msra.mxu3 %v858_v3 }
 0x488   : > { %877 = vmatpush.msra.mxu3 %v857_v4 }
 0x48a   : > { %v719_v29 = vld [vmem:[#allocation2 + $0x18] ss:$2 sm:$0xff]  ;;  %v721_v30 = vld [vmem:[#allocation2 + $0x19] ss:$2 sm:$0xff]  ;;  %878 = vmatpush.msra.mxu3 %v856_v9 }
 0x48b   : > { %726 = vrot.lane.b32.xlu2 %v719_v29, %s1147_s28  ;;  %734 = vrot.lane.b32.xlu0 %v721_v30, %s1146_s27  ;;  %v717_v39 = vld [vmem:[#allocation2 + $0x17] ss:$2 sm:$0xff]  ;;  %v1512_v49 = vld [vmem:[#allocation3] ss:$2 sm:$0xf] }
 0x48c   : > { %v1514_v50 = vld [vmem:[#allocation3 + $0x1] ss:$2 sm:$0xf]  ;;  %879 = vmatpush.msra.mxu3 %v855_v18 }
 0x4e5   : > { %v727_v38 = vpop.permute.xlu2 %726 }
 0x4e6   : > { %v739_v40 = vsel %vm304_vm6, %v717_v39, %v727_v38 }
 0x4f1   : > { %v733_v34 = vpop.permute.xlu1 %732  ;;  %v725_v35 = vpop.permute.xlu0 %724 }
 0x4f2   : > { %v738_v36 = vsel %vm304_vm6, %v716_v26, %v725_v35 }
 0x4f3   : > { %v740_v37 = vsel %vm363_vm8, %v738_v36, %v733_v34  ;;  %v529_v34 = vmax.f32 %v1512_v49, %v1514_v50 }
 0x4f4   : > { %999 = vmatmul.msk.f32.vlgmr.msrb.gmra.mxu3 %vm229_vm4, %v740_v37 }
 0x4fd   : > { %v735_v41 = vpop.permute.xlu0 %734 }
 0x4fe   : > { %v741_v42 = vsel %vm363_vm8, %v739_v40, %v735_v41 }
 0x4ff   : > { %1000 = vmatmul.msk.f32.gmra.mxu3 %vm229_vm4, %v741_v42 }
 0x577   : > { %v768_v44 = vpop.f32.mrf.mxu3 }
 0x578   : > { %v776_v45 = vmax.f32 %v768_v44, 0.0 }
 0x57a   : > { %v779_v47 = vmul.f32 %v1073_v43, %v776_v45 }
 0x57c   : > { %v782_v48 = vadd.f32 %v1074_v46, %v779_v47 }
 0x57e   : > { %784 = vst.msk [vmem:[#allocation3] sm:$0xff] %vm304_vm6, %v782_v48 }
 0x582   : > { %v771_v51 = vpop.f32.mrf.mxu3 }
 0x583   : > { %v777_v52 = vmax.f32 %v771_v51, 0.0 }
 0x585   : > { %v780_v53 = vmul.f32 %v1073_v43, %v777_v52 }
 0x587   : > { %v783_v54 = vadd.f32 %v1074_v46, %v780_v53 }
 0x589   : > { %785 = vst.msk [vmem:[#allocation3 + $0x8] sm:$0xff] %vm304_vm6, %v783_v54 }
 0x590   : > { %v786_v55 = vld [vmem:[#allocation3] ss:$2 sm:$0xff]  ;;  %v787_v56 = vld [vmem:[#allocation3 + $0x1] ss:$2 sm:$0xff] }
 0x591   : > { %v788_v57 = vadd.f32 %v787_v56, %v786_v55 }
 0x593   : > { %v789_v58 = vmul.f32 0.5, %v788_v57 }
 0x595   : > { %792 = vst.msk [vmem:[#allocation2 + $0x8] sm:$0xff] %vm304_vm6, %v789_v58 }
 0x59c   : > { %v795_v60 = vld [vmem:[#allocation2 + $0x9] sm:$0xff] }
 0x59d   : > { %v794_v61 = vld [vmem:[#allocation2 + $0x8] sm:$0xff]  ;;  %801 = vrot.lane.b32.xlu2 %v795_v60, %s1146_s27  ;;  %840 = vst.msk [vmem:[#allocation2 + $0x10] sm:$0x1] %vm472_vm12, %v1143_v0 }
 0x59e   : > { %797 = vrot.lane.b32.xlu1 %v794_v61, %s1147_s28  ;;  %v793_v62 = vld [vmem:[#allocation2 + $0x7] sm:$0xff] }
 0x59f   : > { %839 = vst.msk [vmem:[#allocation2 + $0x7] sm:$0x1] %vm472_vm12, %v1143_v0 }
 0x5f7   : > { %v802_v7 = vpop.permute.xlu2 %801 }
 0x610   : > { %v798_v2 = vpop.permute.xlu1 %797 }
 0x611   : > { %v804_v1 = vsel %vm304_vm6, %v793_v62, %v798_v2 }
 0x612   : > { %v805_v0 = vsel %vm363_vm8, %v804_v1, %v802_v7 }
 0x613   : > { %1001 = vmatmul.msk.f32.vlgmr.msra.gmra.mxu1 %vm229_vm4, %v805_v0 }
 0x690   : > { %v829_v11 = vpop.f32.mrf.mxu1 }
 0x691   : > { %v834_v12 = vmax.f32 %v829_v11, 0.0 }
 0x693   : > { %v836_v14 = vmul.f32 %v1075_v10, %v834_v12 }
 0x695   : > { %v838_v15 = vadd.f32 %v1076_v13, %v836_v14 }
 0x697   : > { %841 = vst.msk [vmem:[#allocation2 + $0x8] sm:$0xff] %vm363_vm8, %v838_v15 }
 0x69e   : > { %v844_v16 = vld [vmem:[#allocation2 + $0x9] sm:$0xff] }
 0x69f   : > { %v843_v17 = vld [vmem:[#allocation2 + $0x8] sm:$0xff]  ;;  %850 = vrot.lane.b32.xlu1 %v844_v16, %s1148_s4 }
 0x6a0   : > { %846 = vrot.lane.b32.xlu0 %v843_v17, %s1146_s27  ;;  %v842_v21 = vld [vmem:[#allocation2 + $0x7] sm:$0xff] }
 0x711   : > { %v851_v19 = vpop.permute.xlu1 %850 }
 0x712   : > { %v847_v20 = vpop.permute.xlu0 %846 }
 0x713   : > { %v853_v22 = vsel %vm363_vm8, %v842_v21, %v847_v20 }
 0x714   : > { %v854_v23 = vsel %vm368_vm9, %v853_v22, %v851_v19 }
 0x715   : > { %1002 = vmatmul.msk.f32.vlgmr.msra.gmra.mxu3 %vm495_vm13, %v854_v23 }
 0x798   : > { %v881_v25 = vpop.f32.mrf.mxu3 }
 0x799   : > { %v886_v26 = vmax.f32 %v881_v25, 0.0 }
 0x79b   : > { %v888_v28 = vmul.f32 %v1077_v24, %v886_v26 }
 0x79d   : > { %v890_v29 = vadd.f32 %v1078_v27, %v888_v28 }
 0x79f   : > { %891 = vst.msk [vmem:[#allocation3] sm:$0xff] %vm363_vm8, %v890_v29 }
 0x7a6   : > { %v892_v30 = vld [vmem:[#allocation3] ss:$2 sm:$0xf]  ;;  %v893_v31 = vld [vmem:[#allocation3 + $0x1] ss:$2 sm:$0xf] }
 0x7a7   : > { %v894_v32 = vadd.f32 %v893_v31, %v892_v30 }
 0x7a9   : > { %v895_v33 = vmul.f32 0.5, %v894_v32 }
 0x7ab   : > { %897 = vrot.lane.b32.xlu2 %v895_v33, %s1146_s27  ;;  %s904_s27 = scalar_lea.sflag [#allocation5], %s161_s17 }
 0x805   : > { %v898_v35 = vpop.permute.xlu2 %897 }
 0x806   : > { %v900_v36 = vsel %vm363_vm8, %v529_v34, %v898_v35 }
 0x807   : > { %902 = vst.msk [vmem:[%s163_s29] sm:$0xf] %vm901_vm15, %v900_v36 }
 0x808   : > { %1106 = shalt.err (!%p1103_p3)
}
 0x809   : > { %1016 = dma.vmem_to_hbm [thread:$0]  (%p1209_p5), %s917_s5, 64, %s919_s6, %s904_s27  }
 0x80a PF: > { %p1022_p4 = scmp.ge.s32.totalorder %s1141_s15, 2  ;;  %s930_s10 = sand.u32 1, %s1129_s12  }
 0x80b   : > { %s931_s11 = scalar_lea.sflag [#allocation5], %s930_s10 }
 0x80c   : > { %p1019_p7 = pnand %p1022_p4, %p1213_p6 }
 0x80e   : > { %p1020_p8 = pneg %p1019_p7 }
 0x810   : > { %1124 = dma.done.wait (%p1020_p8), %s931_s11, 64  }
 0x811   : > { %1126 = vsyncadd (%p1020_p8), %s931_s11, 4294967232  ;;  %p13_p9 = scmp.ge.s32.totalorder %s1196_s18, 4   ;;  %s1616_s12 = smov %s1133_s13 }
 0x812   : > { %s1617_s13 = smov %s1137_s14  ;;  %s1618_s14 = smov %s1207_s21 }
 0x813   : > { %s1619_s15 = smov %s1196_s18  ;;  %15 = sbr.rel (!%p13_p9) target bundleno = 3 (0x3), region = 78 }
 0x818   :  { %937 = vsyncpa [#allocation5], 1 }
 0x819   :  { %939 = vsyncpa [#allocation5 + $0x1], 1 }

</bundles_post_ra>
